<compile_context>
chip_gen: v7x
topology: tpu7x:2x2x1
jax: 0.10.0
libtpu: 0.0.40
codegen_flags: <defaults>
</compile_context>

<pallas_src>
import jax
import jax.numpy as jnp
from jax.experimental import pallas as pl
from jax.experimental.pallas import tpu as pltpu


def mlp_kernel(x_ref,
               w1_ref, b1_ref,
               w2_ref, b2_ref,
               w3_ref, b3_ref,
               w4_ref, b4_ref,
               w5_ref, b5_ref,
               o_ref):
    # Hot path: chain of bf16 MXU matmuls (f32 accumulation) + f32 bias/ReLU,
    # all VMEM-resident.  Final layer is also an MXU pass producing a
    # lane-dense (TM, 128) slab whose column 0 is the real output.
    dt = w1_ref.dtype  # bf16 compute dtype for matmul inputs
    h = x_ref[...].astype(dt)

    h = jnp.dot(h, w1_ref[...], preferred_element_type=jnp.float32) + b1_ref[...]
    h = jnp.maximum(h, 0.0).astype(dt)

    h = jnp.dot(h, w2_ref[...], preferred_element_type=jnp.float32) + b2_ref[...]
    h = jnp.maximum(h, 0.0).astype(dt)

    h = jnp.dot(h, w3_ref[...], preferred_element_type=jnp.float32) + b3_ref[...]
    h = jnp.maximum(h, 0.0).astype(dt)

    h = jnp.dot(h, w4_ref[...], preferred_element_type=jnp.float32) + b4_ref[...]
    h = jnp.maximum(h, 0.0).astype(dt)

    out = jnp.dot(h, w5_ref[...], preferred_element_type=jnp.float32) + b5_ref[...]
    o_ref[...] = out.astype(o_ref.dtype)


def _round_up(x, m):
    return ((x + m - 1) // m) * m


def _pad_axis(a, axis, new_size):
    pad = new_size - a.shape[axis]
    if pad == 0:
        return a
    widths = [(0, 0)] * a.ndim
    widths[axis] = (0, pad)
    return jnp.pad(a, widths)


def prepare_params(params, lane=128, compute_dtype=jnp.bfloat16):
    """Zero-pad every layer's fan-out (and the first layer's fan-in) up to a
    multiple of `lane` so all intermediates -- including the final output
    slab -- are lane-dense.  Padding is exactly equivalent math: padded units
    get zero weights/bias -> zero activations -> zero contribution.  Weights
    are stored in `compute_dtype` (bf16) for the MXU; biases stay f32."""
    out = []
    prev_out = None
    for i, (w, b) in enumerate(params):
        fin, fout = w.shape
        fin_pad = _round_up(fin, lane) if i == 0 else prev_out
        fout_pad = _round_up(fout, lane)
        w_p = _pad_axis(_pad_axis(w, 0, fin_pad), 1, fout_pad).astype(compute_dtype)
        b_p = _pad_axis(b, 1, fout_pad).astype(jnp.float32)
        out.append((w_p, b_p))
        prev_out = fout_pad
    return out


def _num_tensorcores():
    """Best-effort count of TensorCores per device (v4 megacore / v7x = 2)."""
    try:
        d = jax.devices()[0]
        nc = getattr(d, "num_cores", None)
        if nc:
            return int(nc)
        kind = str(getattr(d, "device_kind", "")).lower()
        if "v4" in kind or "7" in kind:
            return 2
    except Exception:
        pass
    return 1


def simple_nn_forward(x, padded_params, *, tm_cap=256):
    """x: (B, Din) f32.  padded_params: output of prepare_params."""
    B, Din = x.shape
    Din_pad = padded_params[0][0].shape[0]   # input width padded to 128 lanes
    H_out = padded_params[-1][0].shape[1]    # padded output width (128)

    # Batch tile: as few grid steps as possible on single-TC chips (per-step
    # overhead bound), but keep >= num_tc steps on dual-TC chips so the
    # "parallel" axis actually shards across both TensorCores.
    num_tc = _num_tensorcores()
    TM = min(tm_cap, _round_up(B, 8))
    if num_tc > 1 and _round_up(B, 8) >= num_tc * 8:
        TM = min(TM, _round_up(pl.cdiv(_round_up(B, 8), num_tc), 8))
    B_pad = _round_up(B, TM)

    x = _pad_axis(_pad_axis(x, 0, B_pad), 1, Din_pad)

    flat = []
    for w, b in padded_params:
        flat.extend([w, b])

    grid = (pl.cdiv(B_pad, TM),)

    # x / out blocked on rows; weights & biases are full-array blocks with
    # constant index maps -> VMEM-resident across grid steps.
    in_specs = [pl.BlockSpec((TM, Din_pad), lambda i: (i, 0))]
    for a in flat:
        in_specs.append(pl.BlockSpec(a.shape, lambda i: (0, 0)))

    out = pl.pallas_call(
        mlp_kernel,
        grid=grid,
        in_specs=in_specs,
        out_specs=pl.BlockSpec((TM, H_out), lambda i: (i, 0)),
        out_shape=jax.ShapeDtypeStruct((B_pad, H_out), jnp.float32),
        compiler_params=pltpu.CompilerParams(
            dimension_semantics=("parallel",)),
    )(x, *flat)

    # Real output is column 0 of the lane-dense slab; padded rows sliced off.
    return out[:B, :1]


def init_linear(key, fan_in, fan_out):
    # Match PyTorch nn.Linear default init: U(-1/sqrt(fan_in), 1/sqrt(fan_in)).
    kw, kb = jax.random.split(key)
    bound = 1.0 / jnp.sqrt(jnp.float32(fan_in))
    # Stored as (in, out) so kernel computes x @ W.
    w = jax.random.uniform(kw, (fan_in, fan_out), jnp.float32, -bound, bound)
    b = jax.random.uniform(kb, (1, fan_out), jnp.float32, -bound, bound)
    return w, b


def reference_forward(x, params):
    # Exact f32 reference (matches the PyTorch module's forward).
    h = x
    n = len(params)
    for i, (w, b) in enumerate(params):
        h = h @ w + b
        if i < n - 1:
            h = jnp.maximum(h, 0.0)
    return h


def matched_reference_forward(x, params):
    # Numerics-matched reference: bf16 matmul inputs, f32 accumulation,
    # f32 bias/ReLU -- same arithmetic as the kernel (padding adds exact zeros).
    h = x
    n = len(params)
    for i, (w, b) in enumerate(params):
        h = jnp.dot(h.astype(jnp.bfloat16), w.astype(jnp.bfloat16),
                    preferred_element_type=jnp.float32) + b
        if i < n - 1:
            h = jnp.maximum(h, 0.0)
    return h


if __name__ == "__main__":
    # TODO(synk): nn.MSELoss (self.criterion) is not part of forward(); not implemented.
    input_dim = 32
    batch = 256  # exercises both the single-step (v5e/v6e) and 2-step (v7x) tilings

    key = jax.random.PRNGKey(0)
    keys = jax.random.split(key, 6)

    dims = [(input_dim, 128), (128, 64), (64, 32), (32, 64), (64, 1)]
    params = [init_linear(keys[i], fi, fo) for i, (fi, fo) in enumerate(dims)]
    padded_params = prepare_params(params)

    x = jax.random.normal(keys[5], (batch, input_dim), jnp.float32)

    out = simple_nn_forward(x, padded_params)
    out = jax.block_until_ready(out)
    assert out.shape == (batch, 1)

    # Tight check against the bf16-matmul-matched reference (same numerics).
    ref_matched = matched_reference_forward(x, params)
    assert jnp.allclose(out, ref_matched, atol=1e-3, rtol=1e-3), float(
        jnp.max(jnp.abs(out - ref_matched)))

    # Loose check against the exact f32 reference (bf16 weights => ~1e-2 tol).
    ref_f32 = reference_forward(x, params)
    assert jnp.allclose(out, ref_f32, atol=3e-2, rtol=3e-2), float(
        jnp.max(jnp.abs(out - ref_f32)))

    print("KERNEL_OK")
</pallas_src>

<mosaic_0001>
module attributes {stable_mosaic.version = 11 : i64} {
  func.func @mlp_kernel(%arg0: i32, %arg1: memref<256x128xf32, #tpu.memory_space<vmem>>, %arg2: memref<128x128xbf16, #tpu.memory_space<vmem>>, %arg3: memref<1x128xf32, #tpu.memory_space<vmem>>, %arg4: memref<128x128xbf16, #tpu.memory_space<vmem>>, %arg5: memref<1x128xf32, #tpu.memory_space<vmem>>, %arg6: memref<128x128xbf16, #tpu.memory_space<vmem>>, %arg7: memref<1x128xf32, #tpu.memory_space<vmem>>, %arg8: memref<128x128xbf16, #tpu.memory_space<vmem>>, %arg9: memref<1x128xf32, #tpu.memory_space<vmem>>, %arg10: memref<128x128xbf16, #tpu.memory_space<vmem>>, %arg11: memref<1x128xf32, #tpu.memory_space<vmem>>, %arg12: memref<256x128xf32, #tpu.memory_space<vmem>>) attributes {dimension_semantics = [#tpu.dimension_semantics<parallel>], iteration_bounds = array<i64: 1>, scalar_prefetch = 0 : i64, scratch_operands = 0 : i64, tpu.core_type = #tpu.core_type<tc>, window_params = [{transform_indices = @transform_0, window_bounds = array<i64: 256, 128>}, {pipeline_mode = #tpu.pipeline_mode<synchronous>, transform_indices = @transform_1, window_bounds = array<i64: 128, 128>}, {pipeline_mode = #tpu.pipeline_mode<synchronous>, transform_indices = @transform_2, window_bounds = array<i64: 1, 128>}, {pipeline_mode = #tpu.pipeline_mode<synchronous>, transform_indices = @transform_3, window_bounds = array<i64: 128, 128>}, {pipeline_mode = #tpu.pipeline_mode<synchronous>, transform_indices = @transform_4, window_bounds = array<i64: 1, 128>}, {pipeline_mode = #tpu.pipeline_mode<synchronous>, transform_indices = @transform_5, window_bounds = array<i64: 128, 128>}, {pipeline_mode = #tpu.pipeline_mode<synchronous>, transform_indices = @transform_6, window_bounds = array<i64: 1, 128>}, {pipeline_mode = #tpu.pipeline_mode<synchronous>, transform_indices = @transform_7, window_bounds = array<i64: 128, 128>}, {pipeline_mode = #tpu.pipeline_mode<synchronous>, transform_indices = @transform_8, window_bounds = array<i64: 1, 128>}, {pipeline_mode = #tpu.pipeline_mode<synchronous>, transform_indices = @transform_9, window_bounds = array<i64: 128, 128>}, {pipeline_mode = #tpu.pipeline_mode<synchronous>, transform_indices = @transform_10, window_bounds = array<i64: 1, 128>}, {transform_indices = @transform_11, window_bounds = array<i64: 256, 128>}]} {
    %c0 = arith.constant 0 : index
    %c0_0 = arith.constant 0 : index
    %0 = vector.load %arg1[%c0, %c0_0] : memref<256x128xf32, #tpu.memory_space<vmem>>, vector<256x128xf32>
    %1 = arith.truncf %0 : vector<256x128xf32> to vector<256x128xbf16>
    %c0_1 = arith.constant 0 : index
    %c0_2 = arith.constant 0 : index
    %2 = vector.load %arg2[%c0_1, %c0_2] : memref<128x128xbf16, #tpu.memory_space<vmem>>, vector<128x128xbf16>
    %cst = arith.constant dense<0.000000e+00> : vector<256x128xf32>
    %3 = tpu.matmul %1, %2, %cst {dimension_numbers = #tpu.dot_dimension_numbers<[1], [0], [0], [1], [0, 0, 1, 1], [], []>} : vector<256x128xbf16>, vector<128x128xbf16>, vector<256x128xf32> -> vector<256x128xf32>
    %c0_3 = arith.constant 0 : index
    %c0_4 = arith.constant 0 : index
    %4 = vector.load %arg3[%c0_3, %c0_4] : memref<1x128xf32, #tpu.memory_space<vmem>>, vector<1x128xf32>
    %5 = vector.broadcast %4 : vector<1x128xf32> to vector<256x128xf32>
    %6 = arith.addf %3, %5 : vector<256x128xf32>
    %cst_5 = arith.constant 0.000000e+00 : f32
    %7 = vector.broadcast %cst_5 : f32 to vector<256x128xf32>
    %8 = arith.maximumf %6, %7 : vector<256x128xf32>
    %9 = arith.truncf %8 : vector<256x128xf32> to vector<256x128xbf16>
    %c0_6 = arith.constant 0 : index
    %c0_7 = arith.constant 0 : index
    %10 = vector.load %arg4[%c0_6, %c0_7] : memref<128x128xbf16, #tpu.memory_space<vmem>>, vector<128x128xbf16>
    %cst_8 = arith.constant dense<0.000000e+00> : vector<256x128xf32>
    %11 = tpu.matmul %9, %10, %cst_8 {dimension_numbers = #tpu.dot_dimension_numbers<[1], [0], [0], [1], [0, 0, 1, 1], [], []>} : vector<256x128xbf16>, vector<128x128xbf16>, vector<256x128xf32> -> vector<256x128xf32>
    %c0_9 = arith.constant 0 : index
    %c0_10 = arith.constant 0 : index
    %12 = vector.load %arg5[%c0_9, %c0_10] : memref<1x128xf32, #tpu.memory_space<vmem>>, vector<1x128xf32>
    %13 = vector.broadcast %12 : vector<1x128xf32> to vector<256x128xf32>
    %14 = arith.addf %11, %13 : vector<256x128xf32>
    %cst_11 = arith.constant 0.000000e+00 : f32
    %15 = vector.broadcast %cst_11 : f32 to vector<256x128xf32>
    %16 = arith.maximumf %14, %15 : vector<256x128xf32>
    %17 = arith.truncf %16 : vector<256x128xf32> to vector<256x128xbf16>
    %c0_12 = arith.constant 0 : index
    %c0_13 = arith.constant 0 : index
    %18 = vector.load %arg6[%c0_12, %c0_13] : memref<128x128xbf16, #tpu.memory_space<vmem>>, vector<128x128xbf16>
    %cst_14 = arith.constant dense<0.000000e+00> : vector<256x128xf32>
    %19 = tpu.matmul %17, %18, %cst_14 {dimension_numbers = #tpu.dot_dimension_numbers<[1], [0], [0], [1], [0, 0, 1, 1], [], []>} : vector<256x128xbf16>, vector<128x128xbf16>, vector<256x128xf32> -> vector<256x128xf32>
    %c0_15 = arith.constant 0 : index
    %c0_16 = arith.constant 0 : index
    %20 = vector.load %arg7[%c0_15, %c0_16] : memref<1x128xf32, #tpu.memory_space<vmem>>, vector<1x128xf32>
    %21 = vector.broadcast %20 : vector<1x128xf32> to vector<256x128xf32>
    %22 = arith.addf %19, %21 : vector<256x128xf32>
    %cst_17 = arith.constant 0.000000e+00 : f32
    %23 = vector.broadcast %cst_17 : f32 to vector<256x128xf32>
    %24 = arith.maximumf %22, %23 : vector<256x128xf32>
    %25 = arith.truncf %24 : vector<256x128xf32> to vector<256x128xbf16>
    %c0_18 = arith.constant 0 : index
    %c0_19 = arith.constant 0 : index
    %26 = vector.load %arg8[%c0_18, %c0_19] : memref<128x128xbf16, #tpu.memory_space<vmem>>, vector<128x128xbf16>
    %cst_20 = arith.constant dense<0.000000e+00> : vector<256x128xf32>
    %27 = tpu.matmul %25, %26, %cst_20 {dimension_numbers = #tpu.dot_dimension_numbers<[1], [0], [0], [1], [0, 0, 1, 1], [], []>} : vector<256x128xbf16>, vector<128x128xbf16>, vector<256x128xf32> -> vector<256x128xf32>
    %c0_21 = arith.constant 0 : index
    %c0_22 = arith.constant 0 : index
    %28 = vector.load %arg9[%c0_21, %c0_22] : memref<1x128xf32, #tpu.memory_space<vmem>>, vector<1x128xf32>
    %29 = vector.broadcast %28 : vector<1x128xf32> to vector<256x128xf32>
    %30 = arith.addf %27, %29 : vector<256x128xf32>
    %cst_23 = arith.constant 0.000000e+00 : f32
    %31 = vector.broadcast %cst_23 : f32 to vector<256x128xf32>
    %32 = arith.maximumf %30, %31 : vector<256x128xf32>
    %33 = arith.truncf %32 : vector<256x128xf32> to vector<256x128xbf16>
    %c0_24 = arith.constant 0 : index
    %c0_25 = arith.constant 0 : index
    %34 = vector.load %arg10[%c0_24, %c0_25] : memref<128x128xbf16, #tpu.memory_space<vmem>>, vector<128x128xbf16>
    %cst_26 = arith.constant dense<0.000000e+00> : vector<256x128xf32>
    %35 = tpu.matmul %33, %34, %cst_26 {dimension_numbers = #tpu.dot_dimension_numbers<[1], [0], [0], [1], [0, 0, 1, 1], [], []>} : vector<256x128xbf16>, vector<128x128xbf16>, vector<256x128xf32> -> vector<256x128xf32>
    %c0_27 = arith.constant 0 : index
    %c0_28 = arith.constant 0 : index
    %36 = vector.load %arg11[%c0_27, %c0_28] : memref<1x128xf32, #tpu.memory_space<vmem>>, vector<1x128xf32>
    %37 = vector.broadcast %36 : vector<1x128xf32> to vector<256x128xf32>
    %38 = arith.addf %35, %37 : vector<256x128xf32>
    %c0_29 = arith.constant 0 : index
    %c0_30 = arith.constant 0 : index
    %39 = vector.load %arg12[%c0_29, %c0_30] : memref<256x128xf32, #tpu.memory_space<vmem>>, vector<256x128xf32>
    tpu.vector_store %arg12[%c0_29, %c0_30], %38 {strides = array<i32>} : memref<256x128xf32, #tpu.memory_space<vmem>>, vector<256x128xf32>,
    return
  }
  func.func @transform_0(%arg0: i32) -> (i32, i32) {
    %c0_i32 = arith.constant 0 : i32
    %c0_i32_0 = arith.constant 0 : i32
    return %arg0, %c0_i32 : i32, i32
  }
  func.func @transform_1(%arg0: i32) -> (i32, i32) {
    %c0_i32 = arith.constant 0 : i32
    %c0_i32_0 = arith.constant 0 : i32
    %c0_i32_1 = arith.constant 0 : i32
    return %c0_i32, %c0_i32_0 : i32, i32
  }
  func.func @transform_2(%arg0: i32) -> (i32, i32) {
    %c0_i32 = arith.constant 0 : i32
    %c0_i32_0 = arith.constant 0 : i32
    %c0_i32_1 = arith.constant 0 : i32
    return %c0_i32, %c0_i32_0 : i32, i32
  }
  func.func @transform_3(%arg0: i32) -> (i32, i32) {
    %c0_i32 = arith.constant 0 : i32
    %c0_i32_0 = arith.constant 0 : i32
    %c0_i32_1 = arith.constant 0 : i32
    return %c0_i32, %c0_i32_0 : i32, i32
  }
  func.func @transform_4(%arg0: i32) -> (i32, i32) {
    %c0_i32 = arith.constant 0 : i32
    %c0_i32_0 = arith.constant 0 : i32
    %c0_i32_1 = arith.constant 0 : i32
    return %c0_i32, %c0_i32_0 : i32, i32
  }
  func.func @transform_5(%arg0: i32) -> (i32, i32) {
    %c0_i32 = arith.constant 0 : i32
    %c0_i32_0 = arith.constant 0 : i32
    %c0_i32_1 = arith.constant 0 : i32
    return %c0_i32, %c0_i32_0 : i32, i32
  }
  func.func @transform_6(%arg0: i32) -> (i32, i32) {
    %c0_i32 = arith.constant 0 : i32
    %c0_i32_0 = arith.constant 0 : i32
    %c0_i32_1 = arith.constant 0 : i32
    return %c0_i32, %c0_i32_0 : i32, i32
  }
  func.func @transform_7(%arg0: i32) -> (i32, i32) {
    %c0_i32 = arith.constant 0 : i32
    %c0_i32_0 = arith.constant 0 : i32
    %c0_i32_1 = arith.constant 0 : i32
    return %c0_i32, %c0_i32_0 : i32, i32
  }
  func.func @transform_8(%arg0: i32) -> (i32, i32) {
    %c0_i32 = arith.constant 0 : i32
    %c0_i32_0 = arith.constant 0 : i32
    %c0_i32_1 = arith.constant 0 : i32
    return %c0_i32, %c0_i32_0 : i32, i32
  }
  func.func @transform_9(%arg0: i32) -> (i32, i32) {
    %c0_i32 = arith.constant 0 : i32
    %c0_i32_0 = arith.constant 0 : i32
    %c0_i32_1 = arith.constant 0 : i32
    return %c0_i32, %c0_i32_0 : i32, i32
  }
  func.func @transform_10(%arg0: i32) -> (i32, i32) {
    %c0_i32 = arith.constant 0 : i32
    %c0_i32_0 = arith.constant 0 : i32
    %c0_i32_1 = arith.constant 0 : i32
    return %c0_i32, %c0_i32_0 : i32, i32
  }
  func.func @transform_11(%arg0: i32) -> (i32, i32) {
    %c0_i32 = arith.constant 0 : i32
    %c0_i32_0 = arith.constant 0 : i32
    return %arg0, %c0_i32 : i32, i32
  }
}

</mosaic_0001>

<bundles_post_ra>
// kernel: tpu_custom_call.1
= control target key start
LH: loop header
LB: loop body
LE: loop exit
PB: predicated region body
PF: predicated region fallthrough
CT: control target
= control target key end

     0   :  { %16 = vsyncpa [#allocation3], 0  ;;  %s2580_s0 = inlined_call_operand.hbm [shape: f32[256,128], index: 0, kind: input, shape index: {}]   ;;  %s2581_s1 = inlined_call_operand.hbm [shape: bf16[128,128], index: 1, kind: input, shape index: {}]   ;;  %s2582_s2 = inlined_call_operand.vmem [shape: f32[1,128], index: 2, kind: input, shape index: {}]   ;;  %s2583_s3 = inlined_call_operand.hbm [shape: bf16[128,128], index: 3, kind: input, shape index: {}]   ;;  %s2584_s4 = inlined_call_operand.vmem [shape: f32[1,128], index: 4, kind: input, shape index: {}]   ;;  %s2585_s5 = inlined_call_operand.hbm [shape: bf16[128,128], index: 5, kind: input, shape index: {}]   ;;  %s2586_s6 = inlined_call_operand.vmem [shape: f32[1,128], index: 6, kind: input, shape index: {}]   ;;  %s2587_s7 = inlined_call_operand.hbm [shape: bf16[128,128], index: 7, kind: input, shape index: {}]   ;;  %s2588_s8 = inlined_call_operand.vmem [shape: f32[1,128], index: 8, kind: input, shape index: {}]   ;;  %s2589_s9 = inlined_call_operand.hbm [shape: bf16[128,128], index: 9, kind: input, shape index: {}]   ;;  %s2590_s10 = inlined_call_operand.vmem [shape: f32[1,128], index: 10, kind: input, shape index: {}]   ;;  %s2591_s11 = inlined_call_operand.hbm [shape: f32[256,128], index: 11, kind: output, shape index: {}]  }
   0x1   :  { %17 = vsyncpa [#allocation6], 0 }
   0x2   :  { %18 = vsyncpa [#allocation9], 0 }
   0x3   :  { %19 = vsyncpa [#allocation12], 0 }
   0x4   :  { %20 = vsyncpa [#allocation4], 0  ;;  %s2210_s17 = smov [#allocation5]   ;;  %s2046_s21 = scalar_lea.hbm %s2581_s1, 1024 }
   0x5   :  { %s38_s18 = sshll.u32 %s2210_s17, 4  ;;  %p2047_p0 = scmp.ne.s32.totalorder %s2581_s1, %s2046_s21  ;;  %s39_s18 = int_to_ptr.vmem [resolvable:$true] %s38_s18 }
   0x6   :  { %p2050_p1 = scmp.lt.u32.totalorder %s2046_s21, %s2581_s1 }
   0x8   :  { %p2052_p2 = pnand %p2050_p1, %p2047_p0 }
   0xa   :  { %2055 = shalt.err (!%p2052_p2)
}
   0xb   :  { %s2056_s26 = scalar_lea.vmem %s39_s18, 1024  ;;  %p2061_p4 = scmp.lt.s32.totalorder %s39_s18, %s39_s18 }
   0xc   :  { %p2057_p3 = scmp.ne.s32.totalorder %s39_s18, %s2056_s26  ;;  %p2062_p5 = scmp.lt.s32.totalorder %s2056_s26, %s2056_s26 }
   0xe   :  { %p2063_p6 = por %p2062_p5, %p2061_p4 }
  0x10   :  { %p2064_p7 = pnand %p2063_p6, %p2057_p3 }
  0x12   :  { %2067 = shalt.err (!%p2064_p7)
}
  0x13   :  { %s2211_s27 = smov 64   ;;  %s2212_s28 = smov 4  }
  0x14   :  { %44 = dma.hbm_to_vmem [thread:$0]  %s2581_s1, 1024, %s39_s18, [#allocation6], %s2211_s27, %s2211_s27, %s2212_s28  }
  0x15   :  { %s2213_s12 = smov [#allocation8]   ;;  %s2214_s14 = smov [#allocation2]  }
  0x16   :  { %s66_s13 = sshll.u32 %s2213_s12, 4  ;;  %s26_s15 = sshll.u32 %s2214_s14, 4  ;;  %s67_s13 = int_to_ptr.vmem [resolvable:$true] %s66_s13  ;;  %s27_s15 = int_to_ptr.vmem [resolvable:$true] %s26_s15 }
  0x17   :  { %s2068_s19 = scalar_lea.hbm %s2585_s5, 1024 }
  0x18   :  { %p2069_p8 = scmp.ne.s32.totalorder %s2585_s5, %s2068_s19  ;;  %p2072_p9 = scmp.lt.u32.totalorder %s2068_s19, %s2585_s5 }
  0x1a   :  { %p2074_p10 = pnand %p2072_p9, %p2069_p8 }
  0x1c   :  { %2077 = shalt.err (!%p2074_p10)
}
  0x1d   :  { %s2078_s1 = scalar_lea.vmem %s67_s13, 1024  ;;  %p2083_p12 = scmp.lt.s32.totalorder %s67_s13, %s67_s13 }
  0x1e   :  { %p2079_p11 = scmp.ne.s32.totalorder %s67_s13, %s2078_s1  ;;  %p2084_p13 = scmp.lt.s32.totalorder %s2078_s1, %s2078_s1 }
  0x20   :  { %p2085_p0 = por %p2084_p13, %p2083_p12 }
  0x22   :  { %p2086_p1 = pnand %p2085_p0, %p2079_p11 }
  0x24   :  { %2089 = shalt.err (!%p2086_p1)
}
  0x25   :  { %72 = dma.hbm_to_vmem [thread:$0]  %s2585_s5, 1024, %s67_s13, [#allocation9], %s2211_s27, %s2211_s27, %s2212_s28  }
  0x26   :  { %s2090_s29 = scalar_lea.hbm %s2580_s0, 4096 }
  0x27   :  { %p2091_p2 = scmp.ne.s32.totalorder %s2580_s0, %s2090_s29  ;;  %p2094_p3 = scmp.lt.u32.totalorder %s2090_s29, %s2580_s0 }
  0x29   :  { %p2096_p4 = pnand %p2094_p3, %p2091_p2 }
  0x2b   :  { %2099 = shalt.err (!%p2096_p4)
}
  0x2c   :  { %s2100_s17 = scalar_lea.vmem %s27_s15, 4096  ;;  %p2105_p6 = scmp.lt.s32.totalorder %s27_s15, %s27_s15 }
  0x2d   :  { %p2101_p5 = scmp.ne.s32.totalorder %s27_s15, %s2100_s17  ;;  %p2106_p7 = scmp.lt.s32.totalorder %s2100_s17, %s2100_s17 }
  0x2f   :  { %p2107_p8 = por %p2106_p7, %p2105_p6 }
  0x31   :  { %p2108_p9 = pnand %p2107_p8, %p2101_p5 }
  0x33   :  { %2111 = shalt.err (!%p2108_p9)
}
  0x34   :  { %s2215_s5 = smov 128   ;;  %s2216_s13 = smov 8  }
  0x35   :  { %32 = dma.hbm_to_vmem [thread:$0]  %s2580_s0, 4096, %s27_s15, [#allocation3], %s2215_s5, %s2215_s5, %s2216_s13  }
  0x36   :  { %s2217_s21 = smov [#allocation7]   ;;  %s2218_s23 = smov [#allocation10]  }
  0x37   :  { %s52_s22 = sshll.u32 %s2217_s21, 4  ;;  %s80_s1 = sshll.u32 %s2218_s23, 4  ;;  %s53_s22 = int_to_ptr.vmem [resolvable:$true] %s52_s22  ;;  %s81_s1 = int_to_ptr.vmem [resolvable:$true] %s80_s1 }
  0x38   :  { %s2112_s25 = scalar_lea.hbm %s2583_s3, 1024 }
  0x39   :  { %p2113_p10 = scmp.ne.s32.totalorder %s2583_s3, %s2112_s25  ;;  %p2116_p11 = scmp.lt.u32.totalorder %s2112_s25, %s2583_s3 }
  0x3b   :  { %p2118_p12 = pnand %p2116_p11, %p2113_p10 }
  0x3d   :  { %2121 = shalt.err (!%p2118_p12)
}
  0x3e   :  { %s2122_s0 = scalar_lea.vmem %s53_s22, 1024  ;;  %p2127_p0 = scmp.lt.s32.totalorder %s53_s22, %s53_s22 }
  0x3f   :  { %p2123_p13 = scmp.ne.s32.totalorder %s53_s22, %s2122_s0  ;;  %p2128_p1 = scmp.lt.s32.totalorder %s2122_s0, %s2122_s0 }
  0x41   :  { %p2129_p2 = por %p2128_p1, %p2127_p0 }
  0x43   :  { %p2130_p3 = pnand %p2129_p2, %p2123_p13 }
  0x45   :  { %2133 = shalt.err (!%p2130_p3)
}
  0x46   :  { %58 = dma.hbm_to_vmem [thread:$0]  %s2583_s3, 1024, %s53_s22, [#allocation6], %s2211_s27, %s2211_s27, %s2212_s28  }
  0x47   :  { %s2134_s19 = scalar_lea.hbm %s2587_s7, 1024 }
  0x48   :  { %p2135_p4 = scmp.ne.s32.totalorder %s2587_s7, %s2134_s19  ;;  %p2138_p5 = scmp.lt.u32.totalorder %s2134_s19, %s2587_s7 }
  0x4a   :  { %p2140_p6 = pnand %p2138_p5, %p2135_p4 }
  0x4c   :  { %2143 = shalt.err (!%p2140_p6)
}
  0x4d   :  { %s2144_s24 = scalar_lea.vmem %s81_s1, 1024  ;;  %p2149_p8 = scmp.lt.s32.totalorder %s81_s1, %s81_s1 }
  0x4e   :  { %p2145_p7 = scmp.ne.s32.totalorder %s81_s1, %s2144_s24  ;;  %p2150_p9 = scmp.lt.s32.totalorder %s2144_s24, %s2144_s24 }
  0x50   :  { %p2151_p10 = por %p2150_p9, %p2149_p8 }
  0x52   :  { %p2152_p11 = pnand %p2151_p10, %p2145_p7 }
  0x54   :  { %2155 = shalt.err (!%p2152_p11)
}
  0x55   :  { %86 = dma.hbm_to_vmem [thread:$0]  %s2587_s7, 1024, %s81_s1, [#allocation9], %s2211_s27, %s2211_s27, %s2212_s28  }
  0x56   :  { %s2219_s25 = smov [#allocation11]   ;;  %s2156_s12 = scalar_lea.hbm %s2589_s9, 1024 }
  0x57   :  { %s94_s26 = sshll.u32 %s2219_s25, 4  ;;  %p2157_p12 = scmp.ne.s32.totalorder %s2589_s9, %s2156_s12  ;;  %s95_s26 = int_to_ptr.vmem [resolvable:$true] %s94_s26 }
  0x58   :  { %p2160_p13 = scmp.lt.u32.totalorder %s2156_s12, %s2589_s9 }
  0x5a   :  { %p2162_p0 = pnand %p2160_p13, %p2157_p12 }
  0x5c   :  { %2165 = shalt.err (!%p2162_p0)
}
  0x5d   :  { %s2166_s17 = scalar_lea.vmem %s95_s26, 1024  ;;  %p2171_p2 = scmp.lt.s32.totalorder %s95_s26, %s95_s26 }
  0x5e   :  { %p2167_p1 = scmp.ne.s32.totalorder %s95_s26, %s2166_s17  ;;  %p2172_p3 = scmp.lt.s32.totalorder %s2166_s17, %s2166_s17 }
  0x60   :  { %p2173_p4 = por %p2172_p3, %p2171_p2 }
  0x62   :  { %p2174_p5 = pnand %p2173_p4, %p2167_p1 }
  0x64   :  { %2177 = shalt.err (!%p2174_p5)
}
  0x65   :  { %100 = dma.hbm_to_vmem [thread:$0]  %s2589_s9, 1024, %s95_s26, [#allocation12], %s2211_s27, %s2211_s27, %s2212_s28  }
  0x66   :  { %2200 = dma.done.wait [#allocation3], 4096  }
  0x67   :  { %2201 = vsyncadd [#allocation3], 4294963200 }
  0x68   :  { %2202 = dma.done.wait [#allocation6], 2048  }
  0x69   :  { %2203 = vsyncadd [#allocation6], 4294965248 }
  0x6a   :  { %2204 = dma.done.wait [#allocation9], 2048  }
  0x6b   :  { %2205 = vsyncadd [#allocation9], 4294965248 }
  0x6c   :  { %2206 = dma.done.wait [#allocation12], 1024  }
  0x6d   :  { %2207 = vsyncadd [#allocation12], 4294966272  ;;  %v2006_v0 = vld [vmem:[#allocation5] sm:$0xff]   ;;  %v2007_v1 = vld [vmem:[#allocation5 + $0x8] sm:$0xff]  }
  0x6e   :  { %1739 = vmatprep.subr.bf16.mxu0 %v2006_v0  ;;  %1979 = vmatprep.subr.bf16.mxu1 %v2006_v0  ;;  %v2008_v2 = vld [vmem:[#allocation5 + $0x10] sm:$0xff]   ;;  %v2009_v3 = vld [vmem:[#allocation5 + $0x18] sm:$0xff]   ;;  %v122_v4 = vld [vmem:[#allocation2] sm:$0xff] }
  0x6f   :  { %1740 = vmatpush3.bf16.msra.mxu0 %v2006_v0  ;;  %1987 = vmatpush3.bf16.msra.mxu1 %v2006_v0  ;;  %v123_v5 = vld [vmem:[#allocation2 + $0x8] sm:$0xff]  ;;  %v2010_v7 = vld [vmem:[#allocation5 + $0x20] sm:$0xff]   ;;  %v2012_v12 = vld [vmem:[#allocation5 + $0x30] sm:$0xff]  }
  0x70   :  { %1741 = vmatprep.subr.bf16.mxu0 %v2007_v1  ;;  %1980 = vmatprep.subr.bf16.mxu1 %v2007_v1  ;;  %v154_v6 = vpack.c.bf16 %v123_v5, %v122_v4  ;;  %v138_v8 = vld [vmem:[#allocation2 + $0x80] sm:$0xff]  ;;  %v139_v9 = vld [vmem:[#allocation2 + $0x88] sm:$0xff]  ;;  %v2013_v13 = vld [vmem:[#allocation5 + $0x38] sm:$0xff]  }
  0x71   :  { %v162_v10 = vpack.c.bf16 %v139_v9, %v138_v8  ;;  %v2011_v11 = vld [vmem:[#allocation5 + $0x28] sm:$0xff]   ;;  %v124_v14 = vld [vmem:[#allocation2 + $0x10] sm:$0xff]  ;;  %v125_v15 = vld [vmem:[#allocation2 + $0x18] sm:$0xff] }
  0x72   :  { %1755 = vmatprep.mubr.bf16.mxu0 %v154_v6  ;;  %v126_v16 = vld [vmem:[#allocation2 + $0x20] sm:$0xff]  ;;  %v127_v17 = vld [vmem:[#allocation2 + $0x28] sm:$0xff]  ;;  %v140_v18 = vld [vmem:[#allocation2 + $0x90] sm:$0xff]  ;;  %v155_v23 = vpack.c.bf16 %v125_v15, %v124_v14 }
  0x73   :  { %1742 = vmatpush3.bf16.msra.mxu0 %v2007_v1  ;;  %1988 = vmatpush3.bf16.msra.mxu1 %v2007_v1  ;;  %v141_v19 = vld [vmem:[#allocation2 + $0x98] sm:$0xff]  ;;  %v142_v20 = vld [vmem:[#allocation2 + $0xa0] sm:$0xff]  ;;  %v143_v21 = vld [vmem:[#allocation2 + $0xa8] sm:$0xff]  ;;  %v156_v24 = vpack.c.bf16 %v127_v17, %v126_v16 }
  0x74   :  { %1743 = vmatprep.subr.bf16.mxu0 %v2008_v2  ;;  %1981 = vmatprep.subr.bf16.mxu1 %v2008_v2  ;;  %v2014_v22 = vld [vmem:[#allocation7] sm:$0xff]   ;;  %v163_v25 = vpack.c.bf16 %v141_v19, %v140_v18  ;;  %v2015_v26 = vld [vmem:[#allocation7 + $0x8] sm:$0xff]   ;;  %v164_v27 = vpack.c.bf16 %v143_v21, %v142_v20  ;;  %v128_v28 = vld [vmem:[#allocation2 + $0x30] sm:$0xff] }
  0x75   :  { %1771 = vmatprep.mubr.bf16.mxu1 %v162_v10  ;;  %v129_v29 = vld [vmem:[#allocation2 + $0x38] sm:$0xff]  ;;  %v130_v30 = vld [vmem:[#allocation2 + $0x40] sm:$0xff]  ;;  %v131_v31 = vld [vmem:[#allocation2 + $0x48] sm:$0xff] }
  0x76   :  { %v144_v32 = vld [vmem:[#allocation2 + $0xb0] sm:$0xff]  ;;  %v145_v33 = vld [vmem:[#allocation2 + $0xb8] sm:$0xff]  ;;  %v146_v34 = vld [vmem:[#allocation2 + $0xc0] sm:$0xff]  ;;  %v157_v37 = vpack.c.bf16 %v129_v29, %v128_v28  ;;  %v158_v38 = vpack.c.bf16 %v131_v31, %v130_v30 }
  0x77   :  { %1744 = vmatpush3.bf16.msra.mxu0 %v2008_v2  ;;  %1989 = vmatpush3.bf16.msra.mxu1 %v2008_v2  ;;  %v147_v35 = vld [vmem:[#allocation2 + $0xc8] sm:$0xff]  ;;  %v2016_v36 = vld [vmem:[#allocation7 + $0x10] sm:$0xff]   ;;  %v165_v39 = vpack.c.bf16 %v145_v33, %v144_v32  ;;  %v2017_v40 = vld [vmem:[#allocation7 + $0x18] sm:$0xff]  }
  0x78   :  { %1745 = vmatprep.subr.bf16.mxu0 %v2009_v3  ;;  %1982 = vmatprep.subr.bf16.mxu1 %v2009_v3  ;;  %v166_v41 = vpack.c.bf16 %v147_v35, %v146_v34  ;;  %v132_v42 = vld [vmem:[#allocation2 + $0x50] sm:$0xff]  ;;  %v133_v43 = vld [vmem:[#allocation2 + $0x58] sm:$0xff]  ;;  %v134_v44 = vld [vmem:[#allocation2 + $0x60] sm:$0xff] }
  0x79   :  { %v135_v45 = vld [vmem:[#allocation2 + $0x68] sm:$0xff]  ;;  %v148_v46 = vld [vmem:[#allocation2 + $0xd0] sm:$0xff]  ;;  %v149_v47 = vld [vmem:[#allocation2 + $0xd8] sm:$0xff]  ;;  %v159_v51 = vpack.c.bf16 %v133_v43, %v132_v42 }
  0x7a   :  { %v150_v48 = vld [vmem:[#allocation2 + $0xe0] sm:$0xff]  ;;  %v151_v49 = vld [vmem:[#allocation2 + $0xe8] sm:$0xff]  ;;  %v160_v52 = vpack.c.bf16 %v135_v45, %v134_v44  ;;  %v167_v53 = vpack.c.bf16 %v149_v47, %v148_v46  ;;  %v136_v56 = vld [vmem:[#allocation2 + $0x70] sm:$0xff] }
  0x7b   :  { %1746 = vmatpush3.bf16.msra.mxu0 %v2009_v3  ;;  %1990 = vmatpush3.bf16.msra.mxu1 %v2009_v3  ;;  %v2018_v50 = vld [vmem:[#allocation7 + $0x20] sm:$0xff]   ;;  %v168_v54 = vpack.c.bf16 %v151_v49, %v150_v48  ;;  %v2019_v55 = vld [vmem:[#allocation7 + $0x28] sm:$0xff]   ;;  %v137_v57 = vld [vmem:[#allocation2 + $0x78] sm:$0xff] }
  0x7c   :  { %1747 = vmatprep.subr.bf16.mxu0 %v2010_v7  ;;  %1983 = vmatprep.subr.bf16.mxu1 %v2010_v7  ;;  %v152_v58 = vld [vmem:[#allocation2 + $0xf0] sm:$0xff]  ;;  %v153_v59 = vld [vmem:[#allocation2 + $0xf8] sm:$0xff]  ;;  %v161_v60 = vpack.c.bf16 %v137_v57, %v136_v56  ;;  %v2022_v0 = vld [vmem:[#allocation8] sm:$0xff]  }
  0x7d   :  { %v169_v61 = vpack.c.bf16 %v153_v59, %v152_v58  ;;  %v2020_v62 = vld [vmem:[#allocation7 + $0x30] sm:$0xff]   ;;  %v2021_v63 = vld [vmem:[#allocation7 + $0x38] sm:$0xff]   ;;  %v2023_v1 = vld [vmem:[#allocation8 + $0x8] sm:$0xff]  }
  0x7e   :  { %v2024_v2 = vld [vmem:[#allocation8 + $0x10] sm:$0xff]   ;;  %v2025_v3 = vld [vmem:[#allocation8 + $0x18] sm:$0xff]   ;;  %v2026_v4 = vld [vmem:[#allocation8 + $0x20] sm:$0xff]  }
  0x7f   :  { %1748 = vmatpush3.bf16.msra.mxu0 %v2010_v7  ;;  %1991 = vmatpush3.bf16.msra.mxu1 %v2010_v7  ;;  %v2027_v5 = vld [vmem:[#allocation8 + $0x28] sm:$0xff]   ;;  %v2374_v6 = vld [vmem:[%s2582_s2] ss:$0 sm:$0xff] }
  0x80   :  { %1749 = vmatprep.subr.bf16.mxu0 %v2011_v11  ;;  %1984 = vmatprep.subr.bf16.mxu1 %v2011_v11 }
  0x83   :  { %1750 = vmatpush3.bf16.msra.mxu0 %v2011_v11  ;;  %1992 = vmatpush3.bf16.msra.mxu1 %v2011_v11 }
  0x84   :  { %1751 = vmatprep.subr.bf16.mxu0 %v2012_v12  ;;  %1985 = vmatprep.subr.bf16.mxu1 %v2012_v12 }
  0x87   :  { %1752 = vmatpush3.bf16.msra.mxu0 %v2012_v12  ;;  %1993 = vmatpush3.bf16.msra.mxu1 %v2012_v12 }
  0x88   :  { %1753 = vmatprep.subr.bf16.mxu0 %v2013_v13  ;;  %1986 = vmatprep.subr.bf16.mxu1 %v2013_v13 }
  0x8b   :  { %1754 = vmatpush3.bf16.msra.mxu0 %v2013_v13  ;;  %1994 = vmatpush3.bf16.msra.mxu1 %v2013_v13 }
  0x8c   :  { %1787 = vmatprep.subr.bf16.mxu1 %v2014_v22  ;;  %1835 = vmatprep.subr.bf16.mxu0 %v2022_v0 }
  0x8e   :  { %1756 = vmatmul.mubr.bf16.vlgmr.msra.gmra.mrb[0].mxu0 %v155_v23  ;;  %1772 = vmatmul.mubr.bf16.vlgmr.msra.gmra.mrb[0].mxu1 %v163_v25 }
  0x8f   :  { %1759 = vmatprep.mubr.bf16.mxu0 %v156_v24  ;;  %1775 = vmatprep.mubr.bf16.mxu1 %v164_v27 }
  0x90   :  { %1788 = vmatpush3.bf16.msra.mxu1 %v2014_v22  ;;  %1836 = vmatpush3.bf16.msra.mxu0 %v2022_v0 }
  0x91   :  { %1789 = vmatprep.subr.bf16.mxu1 %v2015_v26  ;;  %1837 = vmatprep.subr.bf16.mxu0 %v2023_v1 }
  0x94   :  { %1790 = vmatpush3.bf16.msra.mxu1 %v2015_v26  ;;  %1838 = vmatpush3.bf16.msra.mxu0 %v2023_v1 }
  0x95   :  { %1791 = vmatprep.subr.bf16.mxu1 %v2016_v36  ;;  %1839 = vmatprep.subr.bf16.mxu0 %v2024_v2 }
  0x96   :  { %1760 = vmatmul.mubr.bf16.gmra.mrb[4].mxu0 %v157_v37  ;;  %1776 = vmatmul.mubr.bf16.gmra.mrb[4].mxu1 %v165_v39 }
  0x97   :  { %1763 = vmatprep.mubr.bf16.mxu0 %v158_v38  ;;  %1779 = vmatprep.mubr.bf16.mxu1 %v166_v41 }
  0x98   :  { %1792 = vmatpush3.bf16.msra.mxu1 %v2016_v36  ;;  %1840 = vmatpush3.bf16.msra.mxu0 %v2024_v2 }
  0x99   :  { %1793 = vmatprep.subr.bf16.mxu1 %v2017_v40  ;;  %1841 = vmatprep.subr.bf16.mxu0 %v2025_v3 }
  0x9c   :  { %1794 = vmatpush3.bf16.msra.mxu1 %v2017_v40  ;;  %1842 = vmatpush3.bf16.msra.mxu0 %v2025_v3 }
  0x9d   :  { %1795 = vmatprep.subr.bf16.mxu1 %v2018_v50  ;;  %1843 = vmatprep.subr.bf16.mxu0 %v2026_v4 }
  0x9e   :  { %1764 = vmatmul.mubr.bf16.gmra.mrb[8].mxu0 %v159_v51  ;;  %1780 = vmatmul.mubr.bf16.gmra.mrb[8].mxu1 %v167_v53 }
  0x9f   :  { %1767 = vmatprep.mubr.bf16.mxu0 %v160_v52  ;;  %1783 = vmatprep.mubr.bf16.mxu1 %v168_v54 }
  0xa0   :  { %1796 = vmatpush3.bf16.msra.mxu1 %v2018_v50  ;;  %1844 = vmatpush3.bf16.msra.mxu0 %v2026_v4 }
  0xa1   :  { %1797 = vmatprep.subr.bf16.mxu1 %v2019_v55  ;;  %1845 = vmatprep.subr.bf16.mxu0 %v2027_v5 }
  0xa4   :  { %1798 = vmatpush3.bf16.msra.mxu1 %v2019_v55  ;;  %1846 = vmatpush3.bf16.msra.mxu0 %v2027_v5 }
  0xa5   :  { %1799 = vmatprep.subr.bf16.mxu1 %v2020_v62 }
  0xa6   :  { %1768 = vmatmul.mubr.bf16.gmra.mrb[12].mxu0 %v161_v60  ;;  %1784 = vmatmul.mubr.bf16.gmra.mrb[12].mxu1 %v169_v61 }
  0xa8   :  { %1800 = vmatpush3.bf16.msra.mxu1 %v2020_v62 }
  0xa9   :  { %1801 = vmatprep.subr.bf16.mxu1 %v2021_v63 }
  0xac   :  { %1802 = vmatpush3.bf16.msra.mxu1 %v2021_v63 }
 0x161   :  { %v1757_v7 = vpop.f32.mrb[0].mxu0  ;;  %v1773_v10 = vpop.f32.mrb[0].mxu1 }
 0x162   :  { %v284_v8 = vadd.f32 %v1757_v7, %v2374_v6  ;;  %v275_v9 = vpop.f32.mrb[1].mxu0  ;;  %v348_v13 = vadd.f32 %v1773_v10, %v2374_v6  ;;  %v339_v14 = vpop.f32.mrb[1].mxu1 }
 0x163   :  { %v276_v11 = vadd.f32 %v2374_v6, %v275_v9  ;;  %v1758_v12 = vpop.f32.mrb[2].mxu0  ;;  %v340_v17 = vadd.f32 %v2374_v6, %v339_v14  ;;  %v1774_v18 = vpop.f32.mrb[2].mxu1 }
 0x164   :  { %v287_v15 = vadd.f32 %v1758_v12, %v2374_v6  ;;  %v278_v16 = vpop.f32.mrb[3].mxu0  ;;  %v420_v20 = vmax.f32 %v348_v13, 0.0  ;;  %v351_v21 = vadd.f32 %v1774_v18, %v2374_v6  ;;  %v342_v22 = vpop.f32.mrb[3].mxu1  ;;  %v404_v23 = vmax.f32 %v284_v8, 0.0 }
 0x165   :  { %v279_v19 = vadd.f32 %v2374_v6, %v278_v16  ;;  %v418_v25 = vmax.f32 %v340_v17, 0.0  ;;  %v343_v26 = vadd.f32 %v2374_v6, %v342_v22  ;;  %v402_v27 = vmax.f32 %v276_v11, 0.0 }
 0x166   :  { %v405_v24 = vmax.f32 %v287_v15, 0.0  ;;  %v421_v29 = vmax.f32 %v351_v21, 0.0 }
 0x167   :  { %v403_v28 = vmax.f32 %v279_v19, 0.0  ;;  %v419_v31 = vmax.f32 %v343_v26, 0.0 }
 0x168   :  { %v435_v30 = vpack.c.bf16 %v405_v24, %v404_v23  ;;  %v2384_v34 = vpack.c.bf16 %v421_v29, %v420_v20 }
 0x169   :  { %v434_v32 = vpack.c.bf16 %v403_v28, %v402_v27  ;;  %v1761_v33 = vpop.f32.mrb[4].mxu0  ;;  %v2387_v37 = vpack.c.bf16 %v419_v31, %v418_v25  ;;  %v1777_v38 = vpop.f32.mrb[4].mxu1 }
 0x16a   :  { %v300_v35 = vadd.f32 %v1761_v33, %v2374_v6  ;;  %v291_v36 = vpop.f32.mrb[5].mxu0  ;;  %v364_v41 = vadd.f32 %v1777_v38, %v2374_v6  ;;  %v355_v42 = vpop.f32.mrb[5].mxu1 }
 0x16b   :  { %v292_v39 = vadd.f32 %v2374_v6, %v291_v36  ;;  %v1762_v40 = vpop.f32.mrb[6].mxu0  ;;  %1803 = vmatprep.mubr.bf16.mxu1 %v434_v32  ;;  %v356_v45 = vadd.f32 %v2374_v6, %v355_v42  ;;  %v1778_v46 = vpop.f32.mrb[6].mxu1 }
 0x16c   :  { %v303_v43 = vadd.f32 %v1762_v40, %v2374_v6  ;;  %v294_v44 = vpop.f32.mrb[7].mxu0  ;;  %1804 = vmatmul.mubr.bf16.vlgmr.msra.gmra.mrb[16].mxu1 %v435_v30  ;;  %v424_v48 = vmax.f32 %v364_v41, 0.0  ;;  %v367_v49 = vadd.f32 %v1778_v46, %v2374_v6  ;;  %v358_v50 = vpop.f32.mrb[7].mxu1  ;;  %v408_v51 = vmax.f32 %v300_v35, 0.0 }
 0x16d   :  { %v295_v47 = vadd.f32 %v2374_v6, %v294_v44  ;;  %v422_v53 = vmax.f32 %v356_v45, 0.0  ;;  %v359_v54 = vadd.f32 %v2374_v6, %v358_v50  ;;  %v406_v55 = vmax.f32 %v292_v39, 0.0 }
 0x16e   :  { %v409_v52 = vmax.f32 %v303_v43, 0.0  ;;  %v425_v57 = vmax.f32 %v367_v49, 0.0 }
 0x16f   :  { %v407_v56 = vmax.f32 %v295_v47, 0.0  ;;  %v423_v59 = vmax.f32 %v359_v54, 0.0 }
 0x170   :  { %v437_v58 = vpack.c.bf16 %v409_v52, %v408_v51  ;;  %v2396_v62 = vpack.c.bf16 %v425_v57, %v424_v48 }
 0x171   :  { %v436_v60 = vpack.c.bf16 %v407_v56, %v406_v55  ;;  %v1765_v61 = vpop.f32.mrb[8].mxu0  ;;  %v444_v1 = vpack.c.bf16 %v423_v59, %v422_v53  ;;  %v1781_v2 = vpop.f32.mrb[8].mxu1  ;;  %v2030_v59 = vld [vmem:[#allocation10] sm:$0xff]  }
 0x172   :  { %v316_v63 = vadd.f32 %v1765_v61, %v2374_v6  ;;  %v307_v0 = vpop.f32.mrb[9].mxu0  ;;  %v380_v5 = vadd.f32 %v1781_v2, %v2374_v6  ;;  %v371_v7 = vpop.f32.mrb[9].mxu1  ;;  %1883 = vmatprep.subr.bf16.mxu1 %v2030_v59  ;;  %v2034_v61 = vld [vmem:[#allocation10 + $0x20] sm:$0xff]  }
 0x173   :  { %v308_v3 = vadd.f32 %v2374_v6, %v307_v0  ;;  %v1766_v4 = vpop.f32.mrb[10].mxu0  ;;  %1807 = vmatprep.mubr.bf16.mxu1 %v436_v60  ;;  %v372_v10 = vadd.f32 %v2374_v6, %v371_v7  ;;  %v1782_v11 = vpop.f32.mrb[10].mxu1  ;;  %v2031_v60 = vld [vmem:[#allocation10 + $0x8] sm:$0xff]   ;;  %1884 = vmatpush3.bf16.msra.mxu1 %v2030_v59  ;;  %v2420_v0 = vld [vmem:[%s2584_s4] ss:$0 sm:$0xff] }
 0x174   :  { %v319_v8 = vadd.f32 %v1766_v4, %v2374_v6  ;;  %v310_v9 = vpop.f32.mrb[11].mxu0  ;;  %1808 = vmatmul.mubr.bf16.gmra.mrb[20].mxu1 %v437_v58  ;;  %v428_v13 = vmax.f32 %v380_v5, 0.0  ;;  %v383_v14 = vadd.f32 %v1782_v11, %v2374_v6  ;;  %v374_v15 = vpop.f32.mrb[11].mxu1  ;;  %v412_v16 = vmax.f32 %v316_v63, 0.0  ;;  %v2029_v58 = vld [vmem:[#allocation8 + $0x38] sm:$0xff]   ;;  %1885 = vmatprep.subr.bf16.mxu1 %v2031_v60  ;;  %v2036_v63 = vld [vmem:[#allocation10 + $0x30] sm:$0xff]  }
 0x175   :  { %v311_v12 = vadd.f32 %v2374_v6, %v310_v9  ;;  %v426_v18 = vmax.f32 %v372_v10, 0.0  ;;  %v375_v19 = vadd.f32 %v2374_v6, %v374_v15  ;;  %v410_v20 = vmax.f32 %v308_v3, 0.0 }
 0x176   :  { %v413_v17 = vmax.f32 %v319_v8, 0.0  ;;  %v429_v22 = vmax.f32 %v383_v14, 0.0 }
 0x177   :  { %v411_v21 = vmax.f32 %v311_v12, 0.0  ;;  %v427_v24 = vmax.f32 %v375_v19, 0.0  ;;  %1886 = vmatpush3.bf16.msra.mxu1 %v2031_v60 }
 0x178   :  { %v439_v23 = vpack.c.bf16 %v413_v17, %v412_v16  ;;  %v447_v27 = vpack.c.bf16 %v429_v22, %v428_v13 }
 0x179   :  { %v438_v25 = vpack.c.bf16 %v411_v21, %v410_v20  ;;  %v1769_v26 = vpop.f32.mrb[12].mxu0  ;;  %v446_v30 = vpack.c.bf16 %v427_v24, %v426_v18  ;;  %v1785_v31 = vpop.f32.mrb[12].mxu1 }
 0x17a   :  { %v332_v28 = vadd.f32 %v1769_v26, %v2374_v6  ;;  %v323_v29 = vpop.f32.mrb[13].mxu0  ;;  %v396_v35 = vadd.f32 %v1785_v31, %v2374_v6  ;;  %v387_v36 = vpop.f32.mrb[13].mxu1 }
 0x17b   :  { %v324_v32 = vadd.f32 %v2374_v6, %v323_v29  ;;  %v1770_v33 = vpop.f32.mrb[14].mxu0  ;;  %1811 = vmatprep.mubr.bf16.mxu1 %v438_v25  ;;  %v388_v40 = vadd.f32 %v2374_v6, %v387_v36  ;;  %v1786_v41 = vpop.f32.mrb[14].mxu1 }
 0x17c   :  { %v335_v38 = vadd.f32 %v1770_v33, %v2374_v6  ;;  %v326_v39 = vpop.f32.mrb[15].mxu0  ;;  %1812 = vmatmul.mubr.bf16.gmra.mrb[24].mxu1 %v439_v23  ;;  %v432_v43 = vmax.f32 %v396_v35, 0.0  ;;  %v399_v44 = vadd.f32 %v1786_v41, %v2374_v6  ;;  %v390_v45 = vpop.f32.mrb[15].mxu1  ;;  %v416_v46 = vmax.f32 %v332_v28, 0.0 }
 0x17d   :  { %v327_v42 = vadd.f32 %v2374_v6, %v326_v39  ;;  %v430_v48 = vmax.f32 %v388_v40, 0.0  ;;  %v391_v49 = vadd.f32 %v2374_v6, %v390_v45  ;;  %v414_v50 = vmax.f32 %v324_v32, 0.0  ;;  %v2028_v6 = vld [vmem:[#allocation8 + $0x30] sm:$0xff]  }
 0x17e   :  { %v417_v47 = vmax.f32 %v335_v38, 0.0  ;;  %v433_v52 = vmax.f32 %v399_v44, 0.0  ;;  %1847 = vmatprep.subr.bf16.mxu0 %v2028_v6 }
 0x17f   :  { %v415_v51 = vmax.f32 %v327_v42, 0.0  ;;  %v431_v54 = vmax.f32 %v391_v49, 0.0  ;;  %1848 = vmatpush3.bf16.msra.mxu0 %v2028_v6 }
 0x180   :  { %v441_v53 = vpack.c.bf16 %v417_v47, %v416_v46  ;;  %v449_v56 = vpack.c.bf16 %v433_v52, %v432_v43  ;;  %1849 = vmatprep.subr.bf16.mxu0 %v2029_v58 }
 0x181   :  { %v440_v55 = vpack.c.bf16 %v415_v51, %v414_v50  ;;  %v448_v57 = vpack.c.bf16 %v431_v54, %v430_v48 }
 0x183   :  { %1815 = vmatprep.mubr.bf16.mxu1 %v440_v55  ;;  %1850 = vmatpush3.bf16.msra.mxu0 %v2029_v58 }
 0x184   :  { %1816 = vmatmul.mubr.bf16.gmra.mrb[28].mxu1 %v441_v53 }
 0x185   :  { %1819 = vmatprep.mubr.bf16.mxu1 %v2387_v37  ;;  %v2032_v37 = vld [vmem:[#allocation10 + $0x10] sm:$0xff]  }
 0x186   :  { %1887 = vmatprep.subr.bf16.mxu1 %v2032_v37 }
 0x187   :  { %1888 = vmatpush3.bf16.msra.mxu1 %v2032_v37 }
 0x18c   :  { %1820 = vmatmul.mubr.bf16.gmra.mrb[32].mxu1 %v2384_v34  ;;  %v2033_v34 = vld [vmem:[#allocation10 + $0x18] sm:$0xff]  }
 0x18d   :  { %1823 = vmatprep.mubr.bf16.mxu1 %v444_v1  ;;  %1889 = vmatprep.subr.bf16.mxu1 %v2033_v34 }
 0x18e   :  { %1890 = vmatpush3.bf16.msra.mxu1 %v2033_v34 }
 0x18f   :  { %1891 = vmatprep.subr.bf16.mxu1 %v2034_v61 }
 0x192   :  { %1892 = vmatpush3.bf16.msra.mxu1 %v2034_v61 }
 0x194   :  { %1824 = vmatmul.mubr.bf16.gmra.mrb[36].mxu1 %v2396_v62  ;;  %v2035_v62 = vld [vmem:[#allocation10 + $0x28] sm:$0xff]  }
 0x195   :  { %1827 = vmatprep.mubr.bf16.mxu1 %v446_v30  ;;  %1893 = vmatprep.subr.bf16.mxu1 %v2035_v62 }
 0x196   :  { %1894 = vmatpush3.bf16.msra.mxu1 %v2035_v62 }
 0x197   :  { %1895 = vmatprep.subr.bf16.mxu1 %v2036_v63 }
 0x19a   :  { %1896 = vmatpush3.bf16.msra.mxu1 %v2036_v63 }
 0x19c   :  { %1828 = vmatmul.mubr.bf16.gmra.mrb[40].mxu1 %v447_v27 }
 0x19d   :  { %1831 = vmatprep.mubr.bf16.mxu1 %v448_v57 }
 0x1a4   :  { %1832 = vmatmul.mubr.bf16.gmra.mrb[44].mxu1 %v449_v56 }
 0x23f   :  { %v1805_v1 = vpop.f32.mrb[16].mxu1 }
 0x240   :  { %v564_v2 = vadd.f32 %v1805_v1, %v2420_v0  ;;  %v555_v3 = vpop.f32.mrb[17].mxu1 }
 0x241   :  { %v556_v4 = vadd.f32 %v2420_v0, %v555_v3  ;;  %v1806_v5 = vpop.f32.mrb[18].mxu1 }
 0x242   :  { %v567_v7 = vadd.f32 %v1806_v5, %v2420_v0  ;;  %v558_v8 = vpop.f32.mrb[19].mxu1  ;;  %v684_v10 = vmax.f32 %v564_v2, 0.0 }
 0x243   :  { %v559_v9 = vadd.f32 %v2420_v0, %v558_v8  ;;  %v682_v12 = vmax.f32 %v556_v4, 0.0 }
 0x244   :  { %v685_v11 = vmax.f32 %v567_v7, 0.0 }
 0x245   :  { %v683_v13 = vmax.f32 %v559_v9, 0.0 }
 0x246   :  { %v715_v14 = vpack.c.bf16 %v685_v11, %v684_v10 }
 0x247   :  { %v714_v15 = vpack.c.bf16 %v683_v13, %v682_v12  ;;  %v1809_v16 = vpop.f32.mrb[20].mxu1 }
 0x248   :  { %v580_v17 = vadd.f32 %v1809_v16, %v2420_v0  ;;  %v571_v18 = vpop.f32.mrb[21].mxu1 }
 0x249   :  { %v572_v19 = vadd.f32 %v2420_v0, %v571_v18  ;;  %v1810_v20 = vpop.f32.mrb[22].mxu1  ;;  %1851 = vmatprep.mubr.bf16.mxu0 %v714_v15 }
 0x24a   :  { %v583_v21 = vadd.f32 %v1810_v20, %v2420_v0  ;;  %v574_v22 = vpop.f32.mrb[23].mxu1  ;;  %1852 = vmatmul.mubr.bf16.vlgmr.msra.gmra.mrb[16].mxu0 %v715_v14  ;;  %v688_v24 = vmax.f32 %v580_v17, 0.0 }
 0x24b   :  { %v575_v23 = vadd.f32 %v2420_v0, %v574_v22  ;;  %v686_v26 = vmax.f32 %v572_v19, 0.0 }
 0x24c   :  { %v689_v25 = vmax.f32 %v583_v21, 0.0 }
 0x24d   :  { %v687_v27 = vmax.f32 %v575_v23, 0.0 }
 0x24e   :  { %v717_v28 = vpack.c.bf16 %v689_v25, %v688_v24 }
 0x24f   :  { %v716_v29 = vpack.c.bf16 %v687_v27, %v686_v26  ;;  %v1813_v30 = vpop.f32.mrb[24].mxu1 }
 0x250   :  { %v596_v31 = vadd.f32 %v1813_v30, %v2420_v0  ;;  %v587_v32 = vpop.f32.mrb[25].mxu1 }
 0x251   :  { %v588_v33 = vadd.f32 %v2420_v0, %v587_v32  ;;  %v1814_v35 = vpop.f32.mrb[26].mxu1  ;;  %1855 = vmatprep.mubr.bf16.mxu0 %v716_v29 }
 0x252   :  { %v599_v36 = vadd.f32 %v1814_v35, %v2420_v0  ;;  %v590_v38 = vpop.f32.mrb[27].mxu1  ;;  %1856 = vmatmul.mubr.bf16.gmra.mrb[20].mxu0 %v717_v28  ;;  %v692_v40 = vmax.f32 %v596_v31, 0.0 }
 0x253   :  { %v591_v39 = vadd.f32 %v2420_v0, %v590_v38  ;;  %v690_v42 = vmax.f32 %v588_v33, 0.0 }
 0x254   :  { %v693_v41 = vmax.f32 %v599_v36, 0.0 }
 0x255   :  { %v691_v43 = vmax.f32 %v591_v39, 0.0 }
 0x256   :  { %v719_v44 = vpack.c.bf16 %v693_v41, %v692_v40 }
 0x257   :  { %v718_v45 = vpack.c.bf16 %v691_v43, %v690_v42  ;;  %v1817_v46 = vpop.f32.mrb[28].mxu1 }
 0x258   :  { %v612_v47 = vadd.f32 %v1817_v46, %v2420_v0  ;;  %v603_v48 = vpop.f32.mrb[29].mxu1 }
 0x259   :  { %v604_v49 = vadd.f32 %v2420_v0, %v603_v48  ;;  %v1818_v50 = vpop.f32.mrb[30].mxu1  ;;  %1859 = vmatprep.mubr.bf16.mxu0 %v718_v45 }
 0x25a   :  { %v615_v51 = vadd.f32 %v1818_v50, %v2420_v0  ;;  %v606_v52 = vpop.f32.mrb[31].mxu1  ;;  %1860 = vmatmul.mubr.bf16.gmra.mrb[24].mxu0 %v719_v44  ;;  %v696_v54 = vmax.f32 %v612_v47, 0.0 }
 0x25b   :  { %v607_v53 = vadd.f32 %v2420_v0, %v606_v52  ;;  %v694_v56 = vmax.f32 %v604_v49, 0.0 }
 0x25c   :  { %v697_v55 = vmax.f32 %v615_v51, 0.0 }
 0x25d   :  { %v695_v57 = vmax.f32 %v607_v53, 0.0  ;;  %v2037_v53 = vld [vmem:[#allocation10 + $0x38] sm:$0xff]  }
 0x25e   :  { %v721_v6 = vpack.c.bf16 %v697_v55, %v696_v54  ;;  %1897 = vmatprep.subr.bf16.mxu1 %v2037_v53  ;;  %v2038_v54 = vld [vmem:[#allocation11] sm:$0xff]   ;;  %v2039_v55 = vld [vmem:[#allocation11 + $0x8] sm:$0xff]  }
 0x25f   :  { %v720_v58 = vpack.c.bf16 %v695_v57, %v694_v56  ;;  %v1821_v59 = vpop.f32.mrb[32].mxu1  ;;  %1898 = vmatpush3.bf16.msra.mxu1 %v2037_v53  ;;  %1931 = vmatprep.subr.bf16.mxu0 %v2038_v54  ;;  %v2040_v56 = vld [vmem:[#allocation11 + $0x10] sm:$0xff]   ;;  %v2042_v57 = vld [vmem:[#allocation11 + $0x20] sm:$0xff]  }
 0x260   :  { %v628_v60 = vadd.f32 %v1821_v59, %v2420_v0  ;;  %v619_v37 = vpop.f32.mrb[33].mxu1  ;;  %1932 = vmatpush3.bf16.msra.mxu0 %v2038_v54  ;;  %v2457_v59 = vld [vmem:[%s2586_s6] ss:$0 sm:$0xff] }
 0x261   :  { %v620_v34 = vadd.f32 %v2420_v0, %v619_v37  ;;  %v1822_v61 = vpop.f32.mrb[34].mxu1  ;;  %1863 = vmatprep.mubr.bf16.mxu0 %v720_v58  ;;  %1933 = vmatprep.subr.bf16.mxu0 %v2039_v55  ;;  %v2044_v58 = vld [vmem:[#allocation11 + $0x30] sm:$0xff]  }
 0x262   :  { %v631_v62 = vadd.f32 %v1822_v61, %v2420_v0  ;;  %v622_v63 = vpop.f32.mrb[35].mxu1  ;;  %1864 = vmatmul.mubr.bf16.gmra.mrb[28].mxu0 %v721_v6  ;;  %v700_v2 = vmax.f32 %v628_v60, 0.0  ;;  %v2043_v6 = vld [vmem:[#allocation11 + $0x28] sm:$0xff]  }
 0x263   :  { %v623_v1 = vadd.f32 %v2420_v0, %v622_v63  ;;  %v698_v4 = vmax.f32 %v620_v34, 0.0 }
 0x264   :  { %v701_v3 = vmax.f32 %v631_v62, 0.0  ;;  %1934 = vmatpush3.bf16.msra.mxu0 %v2039_v55 }
 0x265   :  { %v699_v5 = vmax.f32 %v623_v1, 0.0  ;;  %1935 = vmatprep.subr.bf16.mxu0 %v2040_v56 }
 0x266   :  { %v723_v7 = vpack.c.bf16 %v701_v3, %v700_v2 }
 0x267   :  { %v722_v8 = vpack.c.bf16 %v699_v5, %v698_v4  ;;  %v1825_v9 = vpop.f32.mrb[36].mxu1 }
 0x268   :  { %v644_v10 = vadd.f32 %v1825_v9, %v2420_v0  ;;  %v635_v11 = vpop.f32.mrb[37].mxu1  ;;  %1936 = vmatpush3.bf16.msra.mxu0 %v2040_v56 }
 0x269   :  { %v636_v12 = vadd.f32 %v2420_v0, %v635_v11  ;;  %v1826_v13 = vpop.f32.mrb[38].mxu1  ;;  %1867 = vmatprep.mubr.bf16.mxu0 %v722_v8 }
 0x26a   :  { %v647_v14 = vadd.f32 %v1826_v13, %v2420_v0  ;;  %v638_v15 = vpop.f32.mrb[39].mxu1  ;;  %1868 = vmatmul.mubr.bf16.gmra.mrb[32].mxu0 %v723_v7  ;;  %v704_v17 = vmax.f32 %v644_v10, 0.0 }
 0x26b   :  { %v639_v16 = vadd.f32 %v2420_v0, %v638_v15  ;;  %v702_v19 = vmax.f32 %v636_v12, 0.0 }
 0x26c   :  { %v705_v18 = vmax.f32 %v647_v14, 0.0 }
 0x26d   :  { %v703_v20 = vmax.f32 %v639_v16, 0.0 }
 0x26e   :  { %v725_v21 = vpack.c.bf16 %v705_v18, %v704_v17 }
 0x26f   :  { %v724_v22 = vpack.c.bf16 %v703_v20, %v702_v19  ;;  %v1829_v23 = vpop.f32.mrb[40].mxu1 }
 0x270   :  { %v660_v24 = vadd.f32 %v1829_v23, %v2420_v0  ;;  %v651_v25 = vpop.f32.mrb[41].mxu1 }
 0x271   :  { %v652_v26 = vadd.f32 %v2420_v0, %v651_v25  ;;  %v1830_v27 = vpop.f32.mrb[42].mxu1  ;;  %1871 = vmatprep.mubr.bf16.mxu0 %v724_v22 }
 0x272   :  { %v663_v28 = vadd.f32 %v1830_v27, %v2420_v0  ;;  %v654_v29 = vpop.f32.mrb[43].mxu1  ;;  %1872 = vmatmul.mubr.bf16.gmra.mrb[36].mxu0 %v725_v21  ;;  %v708_v31 = vmax.f32 %v660_v24, 0.0 }
 0x273   :  { %v655_v30 = vadd.f32 %v2420_v0, %v654_v29  ;;  %v706_v33 = vmax.f32 %v652_v26, 0.0 }
 0x274   :  { %v709_v32 = vmax.f32 %v663_v28, 0.0 }
 0x275   :  { %v707_v35 = vmax.f32 %v655_v30, 0.0 }
 0x276   :  { %v727_v36 = vpack.c.bf16 %v709_v32, %v708_v31 }
 0x277   :  { %v726_v38 = vpack.c.bf16 %v707_v35, %v706_v33  ;;  %v1833_v39 = vpop.f32.mrb[44].mxu1 }
 0x278   :  { %v676_v40 = vadd.f32 %v1833_v39, %v2420_v0  ;;  %v667_v41 = vpop.f32.mrb[45].mxu1 }
 0x279   :  { %v668_v42 = vadd.f32 %v2420_v0, %v667_v41  ;;  %v1834_v43 = vpop.f32.mrb[46].mxu1  ;;  %1875 = vmatprep.mubr.bf16.mxu0 %v726_v38 }
 0x27a   :  { %v679_v44 = vadd.f32 %v1834_v43, %v2420_v0  ;;  %v670_v45 = vpop.f32.mrb[47].mxu1  ;;  %1876 = vmatmul.mubr.bf16.gmra.mrb[40].mxu0 %v727_v36  ;;  %v712_v47 = vmax.f32 %v676_v40, 0.0 }
 0x27b   :  { %v671_v46 = vadd.f32 %v2420_v0, %v670_v45  ;;  %v710_v49 = vmax.f32 %v668_v42, 0.0  ;;  %v2041_v0 = vld [vmem:[#allocation11 + $0x18] sm:$0xff]  }
 0x27c   :  { %v713_v48 = vmax.f32 %v679_v44, 0.0  ;;  %1937 = vmatprep.subr.bf16.mxu0 %v2041_v0 }
 0x27d   :  { %v711_v50 = vmax.f32 %v671_v46, 0.0  ;;  %1938 = vmatpush3.bf16.msra.mxu0 %v2041_v0 }
 0x27e   :  { %v729_v51 = vpack.c.bf16 %v713_v48, %v712_v47  ;;  %1939 = vmatprep.subr.bf16.mxu0 %v2042_v57 }
 0x27f   :  { %v728_v52 = vpack.c.bf16 %v711_v50, %v710_v49 }
 0x281   :  { %1879 = vmatprep.mubr.bf16.mxu0 %v728_v52  ;;  %1940 = vmatpush3.bf16.msra.mxu0 %v2042_v57 }
 0x282   :  { %1880 = vmatmul.mubr.bf16.gmra.mrb[44].mxu0 %v729_v51  ;;  %1941 = vmatprep.subr.bf16.mxu0 %v2043_v6 }
 0x285   :  { %1942 = vmatpush3.bf16.msra.mxu0 %v2043_v6 }
 0x286   :  { %1943 = vmatprep.subr.bf16.mxu0 %v2044_v58 }
 0x289   :  { %1944 = vmatpush3.bf16.msra.mxu0 %v2044_v58 }
 0x31d   :  { %v1853_v60 = vpop.f32.mrb[16].mxu0 }
 0x31e   :  { %v844_v37 = vadd.f32 %v1853_v60, %v2457_v59  ;;  %v835_v34 = vpop.f32.mrb[17].mxu0 }
 0x31f   :  { %v836_v61 = vadd.f32 %v2457_v59, %v835_v34  ;;  %v1854_v62 = vpop.f32.mrb[18].mxu0 }
 0x320   :  { %v847_v63 = vadd.f32 %v1854_v62, %v2457_v59  ;;  %v838_v1 = vpop.f32.mrb[19].mxu0  ;;  %v964_v3 = vmax.f32 %v844_v37, 0.0 }
 0x321   :  { %v839_v2 = vadd.f32 %v2457_v59, %v838_v1  ;;  %v962_v5 = vmax.f32 %v836_v61, 0.0 }
 0x322   :  { %v965_v4 = vmax.f32 %v847_v63, 0.0 }
 0x323   :  { %v963_v7 = vmax.f32 %v839_v2, 0.0 }
 0x324   :  { %v995_v8 = vpack.c.bf16 %v965_v4, %v964_v3 }
 0x325   :  { %v994_v9 = vpack.c.bf16 %v963_v7, %v962_v5  ;;  %v1857_v10 = vpop.f32.mrb[20].mxu0 }
 0x326   :  { %v860_v11 = vadd.f32 %v1857_v10, %v2457_v59  ;;  %v851_v12 = vpop.f32.mrb[21].mxu0 }
 0x327   :  { %v852_v13 = vadd.f32 %v2457_v59, %v851_v12  ;;  %v1858_v14 = vpop.f32.mrb[22].mxu0  ;;  %1899 = vmatprep.mubr.bf16.mxu1 %v994_v9 }
 0x328   :  { %v863_v15 = vadd.f32 %v1858_v14, %v2457_v59  ;;  %v854_v16 = vpop.f32.mrb[23].mxu0  ;;  %1900 = vmatmul.mubr.bf16.vlgmr.msra.gmra.mrb[48].mxu1 %v995_v8  ;;  %v968_v18 = vmax.f32 %v860_v11, 0.0 }
 0x329   :  { %v855_v17 = vadd.f32 %v2457_v59, %v854_v16  ;;  %v966_v20 = vmax.f32 %v852_v13, 0.0 }
 0x32a   :  { %v969_v19 = vmax.f32 %v863_v15, 0.0 }
 0x32b   :  { %v967_v21 = vmax.f32 %v855_v17, 0.0 }
 0x32c   :  { %v997_v22 = vpack.c.bf16 %v969_v19, %v968_v18 }
 0x32d   :  { %v996_v23 = vpack.c.bf16 %v967_v21, %v966_v20  ;;  %v1861_v24 = vpop.f32.mrb[24].mxu0 }
 0x32e   :  { %v876_v25 = vadd.f32 %v1861_v24, %v2457_v59  ;;  %v867_v26 = vpop.f32.mrb[25].mxu0 }
 0x32f   :  { %v868_v27 = vadd.f32 %v2457_v59, %v867_v26  ;;  %v1862_v28 = vpop.f32.mrb[26].mxu0  ;;  %1903 = vmatprep.mubr.bf16.mxu1 %v996_v23 }
 0x330   :  { %v879_v29 = vadd.f32 %v1862_v28, %v2457_v59  ;;  %v870_v30 = vpop.f32.mrb[27].mxu0  ;;  %1904 = vmatmul.mubr.bf16.gmra.mrb[52].mxu1 %v997_v22  ;;  %v972_v32 = vmax.f32 %v876_v25, 0.0 }
 0x331   :  { %v871_v31 = vadd.f32 %v2457_v59, %v870_v30  ;;  %v970_v35 = vmax.f32 %v868_v27, 0.0 }
 0x332   :  { %v973_v33 = vmax.f32 %v879_v29, 0.0 }
 0x333   :  { %v971_v36 = vmax.f32 %v871_v31, 0.0 }
 0x334   :  { %v999_v38 = vpack.c.bf16 %v973_v33, %v972_v32 }
 0x335   :  { %v998_v39 = vpack.c.bf16 %v971_v36, %v970_v35  ;;  %v1865_v40 = vpop.f32.mrb[28].mxu0 }
 0x336   :  { %v892_v41 = vadd.f32 %v1865_v40, %v2457_v59  ;;  %v883_v42 = vpop.f32.mrb[29].mxu0 }
 0x337   :  { %v884_v43 = vadd.f32 %v2457_v59, %v883_v42  ;;  %v1866_v44 = vpop.f32.mrb[30].mxu0  ;;  %1907 = vmatprep.mubr.bf16.mxu1 %v998_v39 }
 0x338   :  { %v895_v45 = vadd.f32 %v1866_v44, %v2457_v59  ;;  %v886_v46 = vpop.f32.mrb[31].mxu0  ;;  %1908 = vmatmul.mubr.bf16.gmra.mrb[56].mxu1 %v999_v38  ;;  %v976_v48 = vmax.f32 %v892_v41, 0.0 }
 0x339   :  { %v887_v47 = vadd.f32 %v2457_v59, %v886_v46  ;;  %v974_v50 = vmax.f32 %v884_v43, 0.0 }
 0x33a   :  { %v977_v49 = vmax.f32 %v895_v45, 0.0 }
 0x33b   :  { %v975_v51 = vmax.f32 %v887_v47, 0.0  ;;  %v2045_v47 = vld [vmem:[#allocation11 + $0x38] sm:$0xff]  }
 0x33c   :  { %v1001_v52 = vpack.c.bf16 %v977_v49, %v976_v48  ;;  %1945 = vmatprep.subr.bf16.mxu0 %v2045_v47  ;;  %v2494_v48 = vld [vmem:[%s2588_s8] ss:$0 sm:$0xff] }
 0x33d   :  { %v1000_v53 = vpack.c.bf16 %v975_v51, %v974_v50  ;;  %v1869_v54 = vpop.f32.mrb[32].mxu0  ;;  %1946 = vmatpush3.bf16.msra.mxu0 %v2045_v47 }
 0x33e   :  { %v908_v55 = vadd.f32 %v1869_v54, %v2457_v59  ;;  %v899_v56 = vpop.f32.mrb[33].mxu0 }
 0x33f   :  { %v900_v0 = vadd.f32 %v2457_v59, %v899_v56  ;;  %v1870_v57 = vpop.f32.mrb[34].mxu0  ;;  %1911 = vmatprep.mubr.bf16.mxu1 %v1000_v53 }
 0x340   :  { %v911_v6 = vadd.f32 %v1870_v57, %v2457_v59  ;;  %v902_v58 = vpop.f32.mrb[35].mxu0  ;;  %1912 = vmatmul.mubr.bf16.gmra.mrb[60].mxu1 %v1001_v52  ;;  %v980_v37 = vmax.f32 %v908_v55, 0.0 }
 0x341   :  { %v903_v60 = vadd.f32 %v2457_v59, %v902_v58  ;;  %v978_v61 = vmax.f32 %v900_v0, 0.0 }
 0x342   :  { %v981_v34 = vmax.f32 %v911_v6, 0.0 }
 0x343   :  { %v979_v62 = vmax.f32 %v903_v60, 0.0 }
 0x344   :  { %v1003_v63 = vpack.c.bf16 %v981_v34, %v980_v37 }
 0x345   :  { %v1002_v1 = vpack.c.bf16 %v979_v62, %v978_v61  ;;  %v1873_v2 = vpop.f32.mrb[36].mxu0 }
 0x346   :  { %v924_v3 = vadd.f32 %v1873_v2, %v2457_v59  ;;  %v915_v4 = vpop.f32.mrb[37].mxu0 }
 0x347   :  { %v916_v5 = vadd.f32 %v2457_v59, %v915_v4  ;;  %v1874_v7 = vpop.f32.mrb[38].mxu0  ;;  %1915 = vmatprep.mubr.bf16.mxu1 %v1002_v1 }
 0x348   :  { %v927_v8 = vadd.f32 %v1874_v7, %v2457_v59  ;;  %v918_v9 = vpop.f32.mrb[39].mxu0  ;;  %1916 = vmatmul.mubr.bf16.gmra.mrb[64].mxu1 %v1003_v63  ;;  %v984_v11 = vmax.f32 %v924_v3, 0.0 }
 0x349   :  { %v919_v10 = vadd.f32 %v2457_v59, %v918_v9  ;;  %v982_v13 = vmax.f32 %v916_v5, 0.0 }
 0x34a   :  { %v985_v12 = vmax.f32 %v927_v8, 0.0 }
 0x34b   :  { %v983_v14 = vmax.f32 %v919_v10, 0.0 }
 0x34c   :  { %v1005_v15 = vpack.c.bf16 %v985_v12, %v984_v11 }
 0x34d   :  { %v1004_v16 = vpack.c.bf16 %v983_v14, %v982_v13  ;;  %v1877_v17 = vpop.f32.mrb[40].mxu0 }
 0x34e   :  { %v940_v18 = vadd.f32 %v1877_v17, %v2457_v59  ;;  %v931_v19 = vpop.f32.mrb[41].mxu0 }
 0x34f   :  { %v932_v20 = vadd.f32 %v2457_v59, %v931_v19  ;;  %v1878_v21 = vpop.f32.mrb[42].mxu0  ;;  %1919 = vmatprep.mubr.bf16.mxu1 %v1004_v16 }
 0x350   :  { %v943_v22 = vadd.f32 %v1878_v21, %v2457_v59  ;;  %v934_v23 = vpop.f32.mrb[43].mxu0  ;;  %1920 = vmatmul.mubr.bf16.gmra.mrb[68].mxu1 %v1005_v15  ;;  %v988_v25 = vmax.f32 %v940_v18, 0.0 }
 0x351   :  { %v935_v24 = vadd.f32 %v2457_v59, %v934_v23  ;;  %v986_v27 = vmax.f32 %v932_v20, 0.0 }
 0x352   :  { %v989_v26 = vmax.f32 %v943_v22, 0.0 }
 0x353   :  { %v987_v28 = vmax.f32 %v935_v24, 0.0 }
 0x354   :  { %v1007_v29 = vpack.c.bf16 %v989_v26, %v988_v25 }
 0x355   :  { %v1006_v30 = vpack.c.bf16 %v987_v28, %v986_v27  ;;  %v1881_v31 = vpop.f32.mrb[44].mxu0 }
 0x356   :  { %v956_v32 = vadd.f32 %v1881_v31, %v2457_v59  ;;  %v947_v33 = vpop.f32.mrb[45].mxu0 }
 0x357   :  { %v948_v35 = vadd.f32 %v2457_v59, %v947_v33  ;;  %v1882_v36 = vpop.f32.mrb[46].mxu0  ;;  %1923 = vmatprep.mubr.bf16.mxu1 %v1006_v30 }
 0x358   :  { %v959_v38 = vadd.f32 %v1882_v36, %v2457_v59  ;;  %v950_v39 = vpop.f32.mrb[47].mxu0  ;;  %1924 = vmatmul.mubr.bf16.gmra.mrb[72].mxu1 %v1007_v29  ;;  %v992_v41 = vmax.f32 %v956_v32, 0.0 }
 0x359   :  { %v951_v40 = vadd.f32 %v2457_v59, %v950_v39  ;;  %v990_v43 = vmax.f32 %v948_v35, 0.0 }
 0x35a   :  { %v993_v42 = vmax.f32 %v959_v38, 0.0 }
 0x35b   :  { %v991_v44 = vmax.f32 %v951_v40, 0.0 }
 0x35c   :  { %v1009_v45 = vpack.c.bf16 %v993_v42, %v992_v41 }
 0x35d   :  { %v1008_v46 = vpack.c.bf16 %v991_v44, %v990_v43 }
 0x35f   :  { %1927 = vmatprep.mubr.bf16.mxu1 %v1008_v46 }
 0x360   :  { %1928 = vmatmul.mubr.bf16.gmra.mrb[76].mxu1 %v1009_v45 }
 0x3fb   :  { %v1901_v49 = vpop.f32.mrb[48].mxu1 }
 0x3fc   :  { %v1124_v50 = vadd.f32 %v1901_v49, %v2494_v48  ;;  %v1115_v59 = vpop.f32.mrb[49].mxu1 }
 0x3fd   :  { %v1116_v51 = vadd.f32 %v2494_v48, %v1115_v59  ;;  %v1902_v52 = vpop.f32.mrb[50].mxu1 }
 0x3fe   :  { %v1127_v53 = vadd.f32 %v1902_v52, %v2494_v48  ;;  %v1118_v54 = vpop.f32.mrb[51].mxu1  ;;  %v1244_v56 = vmax.f32 %v1124_v50, 0.0 }
 0x3ff   :  { %v1119_v55 = vadd.f32 %v2494_v48, %v1118_v54  ;;  %v1242_v57 = vmax.f32 %v1116_v51, 0.0 }
 0x400   :  { %v1245_v0 = vmax.f32 %v1127_v53, 0.0 }
 0x401   :  { %v1243_v6 = vmax.f32 %v1119_v55, 0.0 }
 0x402   :  { %v1275_v58 = vpack.c.bf16 %v1245_v0, %v1244_v56 }
 0x403   :  { %v1274_v60 = vpack.c.bf16 %v1243_v6, %v1242_v57  ;;  %v1905_v37 = vpop.f32.mrb[52].mxu1 }
 0x404   :  { %v1140_v34 = vadd.f32 %v1905_v37, %v2494_v48  ;;  %v1131_v61 = vpop.f32.mrb[53].mxu1 }
 0x405   :  { %v1132_v62 = vadd.f32 %v2494_v48, %v1131_v61  ;;  %v1906_v63 = vpop.f32.mrb[54].mxu1  ;;  %1947 = vmatprep.mubr.bf16.mxu0 %v1274_v60 }
 0x406   :  { %v1143_v1 = vadd.f32 %v1906_v63, %v2494_v48  ;;  %v1134_v2 = vpop.f32.mrb[55].mxu1  ;;  %1948 = vmatmul.mubr.bf16.vlgmr.msra.gmra.mrb[48].mxu0 %v1275_v58  ;;  %v1248_v4 = vmax.f32 %v1140_v34, 0.0 }
 0x407   :  { %v1135_v3 = vadd.f32 %v2494_v48, %v1134_v2  ;;  %v1246_v7 = vmax.f32 %v1132_v62, 0.0 }
 0x408   :  { %v1249_v5 = vmax.f32 %v1143_v1, 0.0 }
 0x409   :  { %v1247_v8 = vmax.f32 %v1135_v3, 0.0 }
 0x40a   :  { %v1277_v9 = vpack.c.bf16 %v1249_v5, %v1248_v4 }
 0x40b   :  { %v1276_v10 = vpack.c.bf16 %v1247_v8, %v1246_v7  ;;  %v1909_v11 = vpop.f32.mrb[56].mxu1 }
 0x40c   :  { %v1156_v12 = vadd.f32 %v1909_v11, %v2494_v48  ;;  %v1147_v13 = vpop.f32.mrb[57].mxu1 }
 0x40d   :  { %v1148_v14 = vadd.f32 %v2494_v48, %v1147_v13  ;;  %v1910_v15 = vpop.f32.mrb[58].mxu1  ;;  %1951 = vmatprep.mubr.bf16.mxu0 %v1276_v10 }
 0x40e   :  { %v1159_v16 = vadd.f32 %v1910_v15, %v2494_v48  ;;  %v1150_v17 = vpop.f32.mrb[59].mxu1  ;;  %1952 = vmatmul.mubr.bf16.gmra.mrb[52].mxu0 %v1277_v9  ;;  %v1252_v19 = vmax.f32 %v1156_v12, 0.0 }
 0x40f   :  { %v1151_v18 = vadd.f32 %v2494_v48, %v1150_v17  ;;  %v1250_v21 = vmax.f32 %v1148_v14, 0.0 }
 0x410   :  { %v1253_v20 = vmax.f32 %v1159_v16, 0.0 }
 0x411   :  { %v1251_v22 = vmax.f32 %v1151_v18, 0.0 }
 0x412   :  { %v1279_v23 = vpack.c.bf16 %v1253_v20, %v1252_v19 }
 0x413   :  { %v1278_v24 = vpack.c.bf16 %v1251_v22, %v1250_v21  ;;  %v1913_v25 = vpop.f32.mrb[60].mxu1 }
 0x414   :  { %v1172_v26 = vadd.f32 %v1913_v25, %v2494_v48  ;;  %v1163_v27 = vpop.f32.mrb[61].mxu1 }
 0x415   :  { %v1164_v28 = vadd.f32 %v2494_v48, %v1163_v27  ;;  %v1914_v29 = vpop.f32.mrb[62].mxu1  ;;  %1955 = vmatprep.mubr.bf16.mxu0 %v1278_v24 }
 0x416   :  { %v1175_v30 = vadd.f32 %v1914_v29, %v2494_v48  ;;  %v1166_v31 = vpop.f32.mrb[63].mxu1  ;;  %1956 = vmatmul.mubr.bf16.gmra.mrb[56].mxu0 %v1279_v23  ;;  %v1256_v33 = vmax.f32 %v1172_v26, 0.0 }
 0x417   :  { %v1167_v32 = vadd.f32 %v2494_v48, %v1166_v31  ;;  %v1254_v36 = vmax.f32 %v1164_v28, 0.0 }
 0x418   :  { %v1257_v35 = vmax.f32 %v1175_v30, 0.0 }
 0x419   :  { %v1255_v38 = vmax.f32 %v1167_v32, 0.0  ;;  %v2531_v32 = vld [vmem:[%s2590_s10] ss:$0 sm:$0xff]  ;;  %s2220_s10 = smov [#allocation13]  }
 0x41a   :  { %v1281_v39 = vpack.c.bf16 %v1257_v35, %v1256_v33  ;;  %s1559_s23 = sshll.u32 %s2220_s10, 4  ;;  %s1560_s23 = int_to_ptr.vmem [resolvable:$true] %s1559_s23 }
 0x41b   :  { %v1280_v40 = vpack.c.bf16 %v1255_v38, %v1254_v36  ;;  %v1917_v41 = vpop.f32.mrb[64].mxu1  ;;  %s2178_s18 = scalar_lea.vmem %s1560_s23, 4096  ;;  %p2183_p7 = scmp.lt.s32.totalorder %s1560_s23, %s1560_s23 }
 0x41c   :  { %v1188_v42 = vadd.f32 %v1917_v41, %v2494_v48  ;;  %v1179_v43 = vpop.f32.mrb[65].mxu1  ;;  %p2179_p6 = scmp.ne.s32.totalorder %s1560_s23, %s2178_s18  ;;  %p2184_p8 = scmp.lt.s32.totalorder %s2178_s18, %s2178_s18 }
 0x41d   :  { %v1180_v44 = vadd.f32 %v2494_v48, %v1179_v43  ;;  %v1918_v45 = vpop.f32.mrb[66].mxu1  ;;  %1959 = vmatprep.mubr.bf16.mxu0 %v1280_v40 }
 0x41e   :  { %v1191_v46 = vadd.f32 %v1918_v45, %v2494_v48  ;;  %v1182_v47 = vpop.f32.mrb[67].mxu1  ;;  %1960 = vmatmul.mubr.bf16.gmra.mrb[60].mxu0 %v1281_v39  ;;  %v1260_v50 = vmax.f32 %v1188_v42, 0.0  ;;  %p2185_p9 = por %p2184_p8, %p2183_p7 }
 0x41f   :  { %v1183_v49 = vadd.f32 %v2494_v48, %v1182_v47  ;;  %v1258_v51 = vmax.f32 %v1180_v44, 0.0 }
 0x420   :  { %v1261_v59 = vmax.f32 %v1191_v46, 0.0  ;;  %p2186_p10 = pnand %p2185_p9, %p2179_p6 }
 0x421   :  { %v1259_v52 = vmax.f32 %v1183_v49, 0.0 }
 0x422   :  { %v1283_v53 = vpack.c.bf16 %v1261_v59, %v1260_v50 }
 0x423   :  { %v1282_v54 = vpack.c.bf16 %v1259_v52, %v1258_v51  ;;  %v1921_v55 = vpop.f32.mrb[68].mxu1 }
 0x424   :  { %v1204_v56 = vadd.f32 %v1921_v55, %v2494_v48  ;;  %v1195_v0 = vpop.f32.mrb[69].mxu1 }
 0x425   :  { %v1196_v57 = vadd.f32 %v2494_v48, %v1195_v0  ;;  %v1922_v6 = vpop.f32.mrb[70].mxu1  ;;  %1963 = vmatprep.mubr.bf16.mxu0 %v1282_v54 }
 0x426   :  { %v1207_v58 = vadd.f32 %v1922_v6, %v2494_v48  ;;  %v1198_v60 = vpop.f32.mrb[71].mxu1  ;;  %1964 = vmatmul.mubr.bf16.gmra.mrb[64].mxu0 %v1283_v53  ;;  %v1264_v34 = vmax.f32 %v1204_v56, 0.0 }
 0x427   :  { %v1199_v37 = vadd.f32 %v2494_v48, %v1198_v60  ;;  %v1262_v62 = vmax.f32 %v1196_v57, 0.0 }
 0x428   :  { %v1265_v61 = vmax.f32 %v1207_v58, 0.0 }
 0x429   :  { %v1263_v63 = vmax.f32 %v1199_v37, 0.0 }
 0x42a   :  { %v1285_v1 = vpack.c.bf16 %v1265_v61, %v1264_v34 }
 0x42b   :  { %v1284_v2 = vpack.c.bf16 %v1263_v63, %v1262_v62  ;;  %v1925_v3 = vpop.f32.mrb[72].mxu1 }
 0x42c   :  { %v1220_v4 = vadd.f32 %v1925_v3, %v2494_v48  ;;  %v1211_v5 = vpop.f32.mrb[73].mxu1 }
 0x42d   :  { %v1212_v7 = vadd.f32 %v2494_v48, %v1211_v5  ;;  %v1926_v8 = vpop.f32.mrb[74].mxu1  ;;  %1967 = vmatprep.mubr.bf16.mxu0 %v1284_v2 }
 0x42e   :  { %v1223_v9 = vadd.f32 %v1926_v8, %v2494_v48  ;;  %v1214_v10 = vpop.f32.mrb[75].mxu1  ;;  %1968 = vmatmul.mubr.bf16.gmra.mrb[68].mxu0 %v1285_v1  ;;  %v1268_v12 = vmax.f32 %v1220_v4, 0.0 }
 0x42f   :  { %v1215_v11 = vadd.f32 %v2494_v48, %v1214_v10  ;;  %v1266_v14 = vmax.f32 %v1212_v7, 0.0 }
 0x430   :  { %v1269_v13 = vmax.f32 %v1223_v9, 0.0 }
 0x431   :  { %v1267_v15 = vmax.f32 %v1215_v11, 0.0 }
 0x432   :  { %v1287_v16 = vpack.c.bf16 %v1269_v13, %v1268_v12 }
 0x433   :  { %v1286_v17 = vpack.c.bf16 %v1267_v15, %v1266_v14  ;;  %v1929_v18 = vpop.f32.mrb[76].mxu1 }
 0x434   :  { %v1236_v19 = vadd.f32 %v1929_v18, %v2494_v48  ;;  %v1227_v20 = vpop.f32.mrb[77].mxu1 }
 0x435   :  { %v1228_v21 = vadd.f32 %v2494_v48, %v1227_v20  ;;  %v1930_v22 = vpop.f32.mrb[78].mxu1  ;;  %1971 = vmatprep.mubr.bf16.mxu0 %v1286_v17 }
 0x436   :  { %v1239_v23 = vadd.f32 %v1930_v22, %v2494_v48  ;;  %v1230_v24 = vpop.f32.mrb[79].mxu1  ;;  %1972 = vmatmul.mubr.bf16.gmra.mrb[72].mxu0 %v1287_v16  ;;  %v1272_v26 = vmax.f32 %v1236_v19, 0.0 }
 0x437   :  { %v1231_v25 = vadd.f32 %v2494_v48, %v1230_v24  ;;  %v1270_v28 = vmax.f32 %v1228_v21, 0.0 }
 0x438   :  { %v1273_v27 = vmax.f32 %v1239_v23, 0.0 }
 0x439   :  { %v1271_v29 = vmax.f32 %v1231_v25, 0.0 }
 0x43a   :  { %v1289_v30 = vpack.c.bf16 %v1273_v27, %v1272_v26 }
 0x43b   :  { %v1288_v31 = vpack.c.bf16 %v1271_v29, %v1270_v28 }
 0x43d   :  { %1975 = vmatprep.mubr.bf16.mxu0 %v1288_v31 }
 0x43e   :  { %1976 = vmatmul.mubr.bf16.gmra.mrb[76].mxu0 %v1289_v30 }
 0x4d9   :  { %v1949_v33 = vpop.f32.mrb[48].mxu0 }
 0x4da   :  { %v1404_v35 = vadd.f32 %v1949_v33, %v2531_v32  ;;  %v1395_v36 = vpop.f32.mrb[49].mxu0 }
 0x4db   :  { %v1396_v38 = vadd.f32 %v2531_v32, %v1395_v36  ;;  %v1950_v48 = vpop.f32.mrb[50].mxu0 }
 0x4dc   :  { %1524 = vst [vmem:[#allocation13 + $0x10] sm:$0xff] %v1404_v35  ;;  %v1407_v39 = vadd.f32 %v1950_v48, %v2531_v32  ;;  %v1398_v40 = vpop.f32.mrb[51].mxu0 }
 0x4dd   :  { %1522 = vst [vmem:[#allocation13] sm:$0xff] %v1396_v38  ;;  %v1399_v41 = vadd.f32 %v2531_v32, %v1398_v40 }
 0x4de   :  { %1525 = vst [vmem:[#allocation13 + $0x18] sm:$0xff] %v1407_v39 }
 0x4df   :  { %1523 = vst [vmem:[#allocation13 + $0x8] sm:$0xff] %v1399_v41 }
 0x4e1   :  { %v1953_v42 = vpop.f32.mrb[52].mxu0 }
 0x4e2   :  { %v1420_v43 = vadd.f32 %v1953_v42, %v2531_v32  ;;  %v1411_v44 = vpop.f32.mrb[53].mxu0 }
 0x4e3   :  { %v1412_v45 = vadd.f32 %v2531_v32, %v1411_v44  ;;  %v1954_v46 = vpop.f32.mrb[54].mxu0 }
 0x4e4   :  { %1528 = vst [vmem:[#allocation13 + $0x30] sm:$0xff] %v1420_v43  ;;  %v1423_v47 = vadd.f32 %v1954_v46, %v2531_v32  ;;  %v1414_v49 = vpop.f32.mrb[55].mxu0 }
 0x4e5   :  { %1526 = vst [vmem:[#allocation13 + $0x20] sm:$0xff] %v1412_v45  ;;  %v1415_v50 = vadd.f32 %v2531_v32, %v1414_v49 }
 0x4e6   :  { %1529 = vst [vmem:[#allocation13 + $0x38] sm:$0xff] %v1423_v47 }
 0x4e7   :  { %1527 = vst [vmem:[#allocation13 + $0x28] sm:$0xff] %v1415_v50 }
 0x4e9   :  { %v1957_v59 = vpop.f32.mrb[56].mxu0 }
 0x4ea   :  { %v1436_v51 = vadd.f32 %v1957_v59, %v2531_v32  ;;  %v1427_v52 = vpop.f32.mrb[57].mxu0 }
 0x4eb   :  { %v1428_v53 = vadd.f32 %v2531_v32, %v1427_v52  ;;  %v1958_v54 = vpop.f32.mrb[58].mxu0 }
 0x4ec   :  { %1532 = vst [vmem:[#allocation13 + $0x50] sm:$0xff] %v1436_v51  ;;  %v1439_v55 = vadd.f32 %v1958_v54, %v2531_v32  ;;  %v1430_v56 = vpop.f32.mrb[59].mxu0 }
 0x4ed   :  { %1530 = vst [vmem:[#allocation13 + $0x40] sm:$0xff] %v1428_v53  ;;  %v1431_v0 = vadd.f32 %v2531_v32, %v1430_v56 }
 0x4ee   :  { %1533 = vst [vmem:[#allocation13 + $0x58] sm:$0xff] %v1439_v55 }
 0x4ef   :  { %1531 = vst [vmem:[#allocation13 + $0x48] sm:$0xff] %v1431_v0 }
 0x4f1   :  { %v1961_v57 = vpop.f32.mrb[60].mxu0 }
 0x4f2   :  { %v1452_v6 = vadd.f32 %v1961_v57, %v2531_v32  ;;  %v1443_v58 = vpop.f32.mrb[61].mxu0 }
 0x4f3   :  { %v1444_v60 = vadd.f32 %v2531_v32, %v1443_v58  ;;  %v1962_v37 = vpop.f32.mrb[62].mxu0 }
 0x4f4   :  { %1536 = vst [vmem:[#allocation13 + $0x70] sm:$0xff] %v1452_v6  ;;  %v1455_v34 = vadd.f32 %v1962_v37, %v2531_v32  ;;  %v1446_v61 = vpop.f32.mrb[63].mxu0 }
 0x4f5   :  { %1534 = vst [vmem:[#allocation13 + $0x60] sm:$0xff] %v1444_v60  ;;  %v1447_v62 = vadd.f32 %v2531_v32, %v1446_v61 }
 0x4f6   :  { %1537 = vst [vmem:[#allocation13 + $0x78] sm:$0xff] %v1455_v34 }
 0x4f7   :  { %1535 = vst [vmem:[#allocation13 + $0x68] sm:$0xff] %v1447_v62 }
 0x4f9   :  { %v1965_v63 = vpop.f32.mrb[64].mxu0 }
 0x4fa   :  { %v1468_v1 = vadd.f32 %v1965_v63, %v2531_v32  ;;  %v1459_v2 = vpop.f32.mrb[65].mxu0 }
 0x4fb   :  { %v1460_v3 = vadd.f32 %v2531_v32, %v1459_v2  ;;  %v1966_v4 = vpop.f32.mrb[66].mxu0 }
 0x4fc   :  { %1540 = vst [vmem:[#allocation13 + $0x90] sm:$0xff] %v1468_v1  ;;  %v1471_v5 = vadd.f32 %v1966_v4, %v2531_v32  ;;  %v1462_v7 = vpop.f32.mrb[67].mxu0 }
 0x4fd   :  { %1538 = vst [vmem:[#allocation13 + $0x80] sm:$0xff] %v1460_v3  ;;  %v1463_v8 = vadd.f32 %v2531_v32, %v1462_v7 }
 0x4fe   :  { %1541 = vst [vmem:[#allocation13 + $0x98] sm:$0xff] %v1471_v5 }
 0x4ff   :  { %1539 = vst [vmem:[#allocation13 + $0x88] sm:$0xff] %v1463_v8 }
 0x501   :  { %v1969_v9 = vpop.f32.mrb[68].mxu0 }
 0x502   :  { %v1484_v10 = vadd.f32 %v1969_v9, %v2531_v32  ;;  %v1475_v11 = vpop.f32.mrb[69].mxu0 }
 0x503   :  { %v1476_v12 = vadd.f32 %v2531_v32, %v1475_v11  ;;  %v1970_v13 = vpop.f32.mrb[70].mxu0 }
 0x504   :  { %1544 = vst [vmem:[#allocation13 + $0xb0] sm:$0xff] %v1484_v10  ;;  %v1487_v14 = vadd.f32 %v1970_v13, %v2531_v32  ;;  %v1478_v15 = vpop.f32.mrb[71].mxu0 }
 0x505   :  { %1542 = vst [vmem:[#allocation13 + $0xa0] sm:$0xff] %v1476_v12  ;;  %v1479_v16 = vadd.f32 %v2531_v32, %v1478_v15 }
 0x506   :  { %1545 = vst [vmem:[#allocation13 + $0xb8] sm:$0xff] %v1487_v14 }
 0x507   :  { %1543 = vst [vmem:[#allocation13 + $0xa8] sm:$0xff] %v1479_v16 }
 0x509   :  { %v1973_v17 = vpop.f32.mrb[72].mxu0 }
 0x50a   :  { %v1500_v18 = vadd.f32 %v1973_v17, %v2531_v32  ;;  %v1491_v19 = vpop.f32.mrb[73].mxu0 }
 0x50b   :  { %v1492_v20 = vadd.f32 %v2531_v32, %v1491_v19  ;;  %v1974_v21 = vpop.f32.mrb[74].mxu0 }
 0x50c   :  { %1548 = vst [vmem:[#allocation13 + $0xd0] sm:$0xff] %v1500_v18  ;;  %v1503_v22 = vadd.f32 %v1974_v21, %v2531_v32  ;;  %v1494_v23 = vpop.f32.mrb[75].mxu0 }
 0x50d   :  { %1546 = vst [vmem:[#allocation13 + $0xc0] sm:$0xff] %v1492_v20  ;;  %v1495_v24 = vadd.f32 %v2531_v32, %v1494_v23 }
 0x50e   :  { %1549 = vst [vmem:[#allocation13 + $0xd8] sm:$0xff] %v1503_v22 }
 0x50f   :  { %1547 = vst [vmem:[#allocation13 + $0xc8] sm:$0xff] %v1495_v24 }
 0x511   :  { %v1977_v25 = vpop.f32.mrb[76].mxu0 }
 0x512   :  { %v1516_v26 = vadd.f32 %v1977_v25, %v2531_v32  ;;  %v1507_v27 = vpop.f32.mrb[77].mxu0 }
 0x513   :  { %v1508_v28 = vadd.f32 %v2531_v32, %v1507_v27  ;;  %v1978_v29 = vpop.f32.mrb[78].mxu0 }
 0x514   :  { %1552 = vst [vmem:[#allocation13 + $0xf0] sm:$0xff] %v1516_v26  ;;  %v1519_v30 = vadd.f32 %v1978_v29, %v2531_v32  ;;  %v1510_v31 = vpop.f32.mrb[79].mxu0 }
 0x515   :  { %1550 = vst [vmem:[#allocation13 + $0xe0] sm:$0xff] %v1508_v28  ;;  %v1511_v33 = vadd.f32 %v2531_v32, %v1510_v31 }
 0x516   :  { %1553 = vst [vmem:[#allocation13 + $0xf8] sm:$0xff] %v1519_v30 }
 0x517   :  { %1551 = vst [vmem:[#allocation13 + $0xe8] sm:$0xff] %v1511_v33 }
 0x518   :  { %2189 = shalt.err (!%p2186_p10)
}
 0x519   :  { %s2190_s22 = scalar_lea.hbm %s2591_s11, 4096 }
 0x51a   :  { %p2191_p11 = scmp.ne.s32.totalorder %s2591_s11, %s2190_s22  ;;  %p2194_p12 = scmp.lt.u32.totalorder %s2190_s22, %s2591_s11 }
 0x51c   :  { %p2196_p13 = pnand %p2194_p12, %p2191_p11 }
 0x51e   :  { %2199 = shalt.err (!%p2196_p13)
}
 0x51f   :  { %1565 = dma.vmem_to_hbm [thread:$0]  %s1560_s23, 4096, %s2591_s11, [#allocation4], %s2215_s5, %s2215_s5, %s2216_s13  }
 0x520   :  { %2208 = dma.done.wait [#allocation4], 4096  }
 0x521   :  { %2209 = vsyncadd [#allocation4], 4294963200 }
 0x522   :  { %1569 = vsyncpa [#allocation3], 1 }
 0x523   :  { %1570 = vsyncpa [#allocation6], 1 }
 0x524   :  { %1571 = vsyncpa [#allocation9], 1 }
 0x525   :  { %1572 = vsyncpa [#allocation12], 1 }
 0x526   :  { %1573 = vsyncpa [#allocation4], 1 }

</bundles_post_ra>
